<compile_context>
chip_gen: v7x
topology: tpu7x:2x2x1
jax: 0.10.0
libtpu: 0.0.40
codegen_flags: <defaults>
</compile_context>

<pallas_src>
import functools

import numpy as np
import jax
import jax.numpy as jnp
from jax import lax
from jax.experimental import pallas as pl
from jax.experimental.pallas import tpu as pltpu

BN_EPS = 1e-5


def _round_up(x, m):
    return pl.cdiv(x, m) * m


def _pick_nblk(n):
    """Images per grid step: amortize per-step overhead, keep >=2 steps if possible."""
    for nb in (8, 4, 2):
        if n % nb == 0 and n // nb >= 2:
            return nb
    return 1


# ------------------------------ Pallas kernel ------------------------------- #

def _fused_head_kernel(x_ref, w1_ref, shift_ref, w2_ref, b2_ref, mask_ref,
                       o_ref, slab_ref, mid_ref, *, Wg, P, R, B, Nblk):
    """Fused conv3x3 + BN(folded) + ReLU + conv3x3 for Nblk images.

    Lane layout: image n owns lanes [n*R, (n+1)*R) of every (., Nblk*R) slab;
    within a region, lane p = j*Wg + i indexes the flattened zero-padded
    output grid (Hg = H+2 rows, Wg = W+3 cols).  Only interior lanes
    (j in [1,H], i in [1,W]) are meaningful; everything else is masked or
    cropped by the wrapper.

    Per-grid-step shapes:
      x_ref    : (Nblk, Cin, F)       flattened zero-padded input planes
      w1_ref   : (Cmid, 9*Cin)        conv1 weights, BN scale folded, taps in K
      shift_ref: (Cmid, 1)            folded BN shift (f32)
      w2_ref   : (9, Cout, Cmid)      conv2 weights, one (Cout, Cmid) per tap
      b2_ref   : (Cout, 1)            conv2 bias (f32)
      mask_ref : (1, Nblk*R)          1.0 on interior output positions
      o_ref    : (1, Cout, Nblk*R)    conv2 output slab (f32, lane-dense)
      slab_ref : (9*Cin, Nblk*R)      conv1 im2col slab (VMEM scratch)
      mid_ref  : (Cmid, B+Nblk*R+B)   masked mid activation + tap-slack borders
    """
    cin = x_ref.shape[1]
    cout = o_ref.shape[1]
    gl = Nblk * R
    offs = [dy * Wg + dx for dy in range(3) for dx in range(3)]

    # ---- conv1 im2col: stack the 9 taps along the contraction dim.  Each tap
    # offset is materialized exactly once; fringe lanes [n*R+P, (n+1)*R) are
    # never written and only ever feed masked / discarded output columns.
    for n in range(Nblk):
        for t, off in enumerate(offs):
            slab_ref[t * cin:(t + 1) * cin, n * R:n * R + P] = \
                x_ref[n, :, off:off + P]

    # ---- conv1 (+ folded BN scale): ONE MXU matmul with K = 9*Cin.
    acc1 = jnp.dot(w1_ref[...], slab_ref[...],
                   preferred_element_type=jnp.float32)            # (Cmid, gl)

    # ---- BN shift + ReLU + interior mask (all f32), then a single aligned
    # lane-dense store into the mid buffer.  The mask zeroes the padded-grid
    # border and inter-image fringe, so conv2's interior taps only ever read
    # exact activations or exact zeros (jnp.where also kills stray NaN/Inf).
    act = jnp.maximum(acc1 + shift_ref[...], 0.0)
    act = jnp.where(mask_ref[...] != 0.0, act, 0.0)
    mid_ref[:, B:B + gl] = act.astype(mid_ref.dtype)

    # ---- conv2: nine accumulating K=Cmid dots; each tap is ONE lane slice of
    # the mid buffer spanning all images (the region stride R is shared by the
    # input, mid and output layouts, so the per-image offsets line up).
    base = B - (Wg + 1)
    acc2 = jnp.zeros((cout, gl), jnp.float32)
    for t, off in enumerate(offs):
        acc2 = acc2 + jnp.dot(w2_ref[t],
                              mid_ref[:, base + off:base + off + gl],
                              preferred_element_type=jnp.float32)
    o_ref[0] = (acc2 + b2_ref[...]).astype(o_ref.dtype)


# ------------------------------ JAX wrapper --------------------------------- #

def seg_head_forward(x_nchw, params, compute_dtype=jnp.bfloat16, nblk=None):
    """Pallas forward for SegmentationHead_NoSigmoid_3x3.  NCHW in / NCHW out."""
    w1, b1, gamma, beta, rmean, rvar, w2, b2 = params
    N, Cin, H, W = x_nchw.shape
    Cmid = w1.shape[0]
    Cout = w2.shape[0]

    Hg, Wg = H + 2, W + 3          # output padded grid (1 extra garbage column)
    P = Hg * Wg                    # flattened padded-grid size per image
    R = _round_up(P, 128)          # per-image lane region (128-aligned)
    B = _round_up(Wg + 1, 128)     # mid-buffer border (conv2 tap slack)
    F = (H + 5) * Wg               # flattened padded-input length per image
    if nblk is None:
        nblk = _pick_nblk(N)
    assert N % nblk == 0, (N, nblk)
    ngroups = N // nblk
    GL = nblk * R
    MBUF = B + GL + B

    # Fold conv1 bias + eval-mode BN into the conv1 weights and a shift:
    #   relu(((conv + b1) - mean) * gamma / sqrt(var + eps) + beta)
    # = relu(conv_with_scaled_weights + shift)
    scale = gamma / jnp.sqrt(rvar + BN_EPS)                           # (Cmid,)
    shift = ((b1 - rmean) * scale + beta).reshape(Cmid, 1).astype(jnp.float32)
    w1s = w1.astype(jnp.float32) * scale[:, None, None, None]         # OIHW
    w1_eff = jnp.transpose(w1s, (0, 2, 3, 1)).reshape(Cmid, 9 * Cin)  # taps in K
    w1_eff = w1_eff.astype(compute_dtype)
    w2_eff = jnp.transpose(w2, (2, 3, 0, 1)).reshape(9, Cout, Cmid)
    w2_eff = w2_eff.astype(compute_dtype)
    b2v = b2.reshape(Cout, 1).astype(jnp.float32)

    # Single wrapper-side pad: rows (2,3), cols (2,1); then a contiguous merge
    # of the last two dims.  Every 3x3 tap becomes a static non-negative lane
    # offset dy*Wg + dx into the flattened plane (in-kernel im2col).
    xp = jnp.pad(x_nchw.astype(compute_dtype),
                 ((0, 0), (0, 0), (2, 3), (2, 1)))                    # (N,Cin,H+5,Wg)
    x_flat = xp.reshape(N, Cin, F)

    # Interior mask of the (Hg, Wg) padded grid, tiled over the image regions.
    # Built with numpy -> compile-time constant, fetched once (constant index_map).
    jj = np.arange(Hg)[:, None]
    ii = np.arange(Wg)[None, :]
    interior = (jj >= 1) & (jj <= H) & (ii >= 1) & (ii <= W)
    m_region = np.zeros((R,), np.float32)
    m_region[:P] = interior.reshape(-1).astype(np.float32)
    mask = jnp.asarray(np.tile(m_region, nblk)[None, :])              # (1, GL)

    kernel = functools.partial(_fused_head_kernel,
                               Wg=Wg, P=P, R=R, B=B, Nblk=nblk)

    out = pl.pallas_call(
        kernel,
        out_shape=jax.ShapeDtypeStruct((ngroups, Cout, GL), jnp.float32),
        grid_spec=pltpu.PrefetchScalarGridSpec(
            num_scalar_prefetch=0,
            grid=(ngroups,),
            in_specs=[
                pl.BlockSpec((nblk, Cin, F), lambda g: (g, 0, 0)),
                pl.BlockSpec((Cmid, 9 * Cin), lambda g: (0, 0)),
                pl.BlockSpec((Cmid, 1), lambda g: (0, 0)),
                pl.BlockSpec((9, Cout, Cmid), lambda g: (0, 0, 0)),
                pl.BlockSpec((Cout, 1), lambda g: (0, 0)),
                pl.BlockSpec((1, GL), lambda g: (0, 0)),
            ],
            out_specs=pl.BlockSpec((1, Cout, GL), lambda g: (g, 0, 0)),
            scratch_shapes=[
                pltpu.VMEM((9 * Cin, GL), compute_dtype),   # conv1 im2col slab
                pltpu.VMEM((Cmid, MBUF), compute_dtype),    # mid activation
            ],
        ),
        compiler_params=pltpu.CompilerParams(
            dimension_semantics=("parallel",)),
    )(x_flat, w1_eff, shift, w2_eff, b2v, mask)

    # Un-batch the lane regions and crop the padded-grid border -> NCHW.
    out = out.reshape(ngroups, Cout, nblk, R)
    out = jnp.transpose(out, (0, 2, 1, 3)).reshape(N, Cout, R)
    out = out[:, :, :P].reshape(N, Cout, Hg, Wg)
    return out[:, :, 1:H + 1, 1:W + 1]


# --------------------------- reference (plain JAX) -------------------------- #

def _ref_forward(x_nchw, params):
    w1, b1, gamma, beta, rmean, rvar, w2, b2 = params
    dn = ("NCHW", "OIHW", "NCHW")
    y = lax.conv_general_dilated(x_nchw, w1, (1, 1), "SAME",
                                 dimension_numbers=dn) + b1[None, :, None, None]
    y = (y - rmean[None, :, None, None]) * (
        gamma / jnp.sqrt(rvar + BN_EPS))[None, :, None, None] \
        + beta[None, :, None, None]
    y = jnp.maximum(y, 0.0)
    y = lax.conv_general_dilated(y, w2, (1, 1), "SAME",
                                 dimension_numbers=dn) + b2[None, :, None, None]
    return y


# ----------------------------------- main ----------------------------------- #

def _make_params(key, cin, cmid, cout):
    ks = jax.random.split(key, 8)
    w1 = 0.1 * jax.random.normal(ks[0], (cmid, cin, 3, 3), jnp.float32)
    b1 = 0.05 * jax.random.normal(ks[1], (cmid,), jnp.float32)
    gamma = 1.0 + 0.1 * jax.random.normal(ks[2], (cmid,), jnp.float32)
    beta = 0.1 * jax.random.normal(ks[3], (cmid,), jnp.float32)
    rmean = 0.05 * jax.random.normal(ks[4], (cmid,), jnp.float32)
    rvar = 0.5 + jnp.abs(0.2 * jax.random.normal(ks[5], (cmid,), jnp.float32))
    w2 = 0.1 * jax.random.normal(ks[6], (cout, cmid, 3, 3), jnp.float32)
    b2 = 0.05 * jax.random.normal(ks[7], (cout,), jnp.float32)
    return (w1, b1, gamma, beta, rmean, rvar, w2, b2)


if __name__ == "__main__":
    # Small shapes: batch=2, backbone_channels=4, spatial=16x16,
    # mid_channels=32, num_outputs=1.
    N, Cin, H, W = 2, 4, 16, 16
    Cmid, Cout = 32, 1

    key = jax.random.PRNGKey(0)
    kx, kp = jax.random.split(key)
    x = jax.random.normal(kx, (N, Cin, H, W), jnp.float32)
    params = _make_params(kp, Cin, Cmid, Cout)

    ref = _ref_forward(x, params)

    # Strict correctness check: f32 compute path.
    fwd_f32 = jax.jit(functools.partial(seg_head_forward,
                                        compute_dtype=jnp.float32))
    out_f32 = jax.block_until_ready(fwd_f32(x, params))
    assert out_f32.shape == (N, Cout, H, W), out_f32.shape
    assert jnp.allclose(out_f32, ref, atol=5e-4, rtol=5e-4), \
        float(jnp.max(jnp.abs(out_f32 - ref)))

    # Performance path: bf16 into the MXU, f32 accumulate + f32 epilogue.
    fwd_bf16 = jax.jit(functools.partial(seg_head_forward,
                                         compute_dtype=jnp.bfloat16))
    out_bf16 = jax.block_until_ready(fwd_bf16(x, params))
    assert out_bf16.shape == (N, Cout, H, W), out_bf16.shape
    assert jnp.allclose(out_bf16, ref, atol=1e-1, rtol=1e-1), \
        float(jnp.max(jnp.abs(out_bf16 - ref)))

    print("KERNEL_OK")
</pallas_src>

<mosaic_0001>
module attributes {stable_mosaic.version = 11 : i64} {
  func.func @_fused_head_kernel(%arg0: i32, %arg1: memref<1x4x399xf32, #tpu.memory_space<vmem>>, %arg2: memref<32x36xf32, #tpu.memory_space<vmem>>, %arg3: memref<32x1xf32, #tpu.memory_space<vmem>>, %arg4: memref<9x1x32xf32, #tpu.memory_space<vmem>>, %arg5: memref<1x1xf32, #tpu.memory_space<vmem>>, %arg6: memref<1x384xf32, #tpu.memory_space<vmem>>, %arg7: memref<1x1x384xf32, #tpu.memory_space<vmem>>, %arg8: memref<36x384xf32, #tpu.memory_space<vmem>>, %arg9: memref<32x640xf32, #tpu.memory_space<vmem>>) attributes {dimension_semantics = [#tpu.dimension_semantics<parallel>], iteration_bounds = array<i64: 2>, scalar_prefetch = 0 : i64, scratch_operands = 2 : i64, tpu.core_type = #tpu.core_type<tc>, window_params = [{transform_indices = @transform_0, window_bounds = array<i64: 1, 4, 399>}, {pipeline_mode = #tpu.pipeline_mode<synchronous>, transform_indices = @transform_1, window_bounds = array<i64: 32, 36>}, {pipeline_mode = #tpu.pipeline_mode<synchronous>, transform_indices = @transform_2, window_bounds = array<i64: 32, 1>}, {pipeline_mode = #tpu.pipeline_mode<synchronous>, transform_indices = @transform_3, window_bounds = array<i64: 9, 1, 32>}, {pipeline_mode = #tpu.pipeline_mode<synchronous>, transform_indices = @transform_4, window_bounds = array<i64: 1, 1>}, {pipeline_mode = #tpu.pipeline_mode<synchronous>, transform_indices = @transform_5, window_bounds = array<i64: 1, 384>}, {transform_indices = @transform_6, window_bounds = array<i64: 1, 1, 384>}]} {
    %c0 = arith.constant 0 : index
    %c0_0 = arith.constant 0 : index
    %c0_1 = arith.constant 0 : index
    %0 = vector.load %arg1[%c0, %c0_0, %c0_1] : memref<1x4x399xf32, #tpu.memory_space<vmem>>, vector<1x4x342xf32>
    %1 = vector.shape_cast %0 : vector<1x4x342xf32> to vector<4x342xf32>
    %c0_2 = arith.constant 0 : index
    %c0_3 = arith.constant 0 : index
    %2 = vector.load %arg8[%c0_2, %c0_3] : memref<36x384xf32, #tpu.memory_space<vmem>>, vector<4x342xf32>
    tpu.vector_store %arg8[%c0_2, %c0_3], %1 {strides = array<i32>} : memref<36x384xf32, #tpu.memory_space<vmem>>, vector<4x342xf32>,
    %c0_4 = arith.constant 0 : index
    %c0_5 = arith.constant 0 : index
    %c1 = arith.constant 1 : index
    %3 = vector.load %arg1[%c0_4, %c0_5, %c1] : memref<1x4x399xf32, #tpu.memory_space<vmem>>, vector<1x4x342xf32>
    %4 = vector.shape_cast %3 : vector<1x4x342xf32> to vector<4x342xf32>
    %c4 = arith.constant 4 : index
    %c0_6 = arith.constant 0 : index
    %5 = vector.load %arg8[%c4, %c0_6] : memref<36x384xf32, #tpu.memory_space<vmem>>, vector<4x342xf32>
    tpu.vector_store %arg8[%c4, %c0_6], %4 {strides = array<i32>} : memref<36x384xf32, #tpu.memory_space<vmem>>, vector<4x342xf32>,
    %c0_7 = arith.constant 0 : index
    %c0_8 = arith.constant 0 : index
    %c2 = arith.constant 2 : index
    %6 = vector.load %arg1[%c0_7, %c0_8, %c2] : memref<1x4x399xf32, #tpu.memory_space<vmem>>, vector<1x4x342xf32>
    %7 = vector.shape_cast %6 : vector<1x4x342xf32> to vector<4x342xf32>
    %c8 = arith.constant 8 : index
    %c0_9 = arith.constant 0 : index
    %8 = vector.load %arg8[%c8, %c0_9] : memref<36x384xf32, #tpu.memory_space<vmem>>, vector<4x342xf32>
    tpu.vector_store %arg8[%c8, %c0_9], %7 {strides = array<i32>} : memref<36x384xf32, #tpu.memory_space<vmem>>, vector<4x342xf32>,
    %c0_10 = arith.constant 0 : index
    %c0_11 = arith.constant 0 : index
    %c19 = arith.constant 19 : index
    %9 = vector.load %arg1[%c0_10, %c0_11, %c19] : memref<1x4x399xf32, #tpu.memory_space<vmem>>, vector<1x4x342xf32>
    %10 = vector.shape_cast %9 : vector<1x4x342xf32> to vector<4x342xf32>
    %c12 = arith.constant 12 : index
    %c0_12 = arith.constant 0 : index
    %11 = vector.load %arg8[%c12, %c0_12] : memref<36x384xf32, #tpu.memory_space<vmem>>, vector<4x342xf32>
    tpu.vector_store %arg8[%c12, %c0_12], %10 {strides = array<i32>} : memref<36x384xf32, #tpu.memory_space<vmem>>, vector<4x342xf32>,
    %c0_13 = arith.constant 0 : index
    %c0_14 = arith.constant 0 : index
    %c20 = arith.constant 20 : index
    %12 = vector.load %arg1[%c0_13, %c0_14, %c20] : memref<1x4x399xf32, #tpu.memory_space<vmem>>, vector<1x4x342xf32>
    %13 = vector.shape_cast %12 : vector<1x4x342xf32> to vector<4x342xf32>
    %c16 = arith.constant 16 : index
    %c0_15 = arith.constant 0 : index
    %14 = vector.load %arg8[%c16, %c0_15] : memref<36x384xf32, #tpu.memory_space<vmem>>, vector<4x342xf32>
    tpu.vector_store %arg8[%c16, %c0_15], %13 {strides = array<i32>} : memref<36x384xf32, #tpu.memory_space<vmem>>, vector<4x342xf32>,
    %c0_16 = arith.constant 0 : index
    %c0_17 = arith.constant 0 : index
    %c21 = arith.constant 21 : index
    %15 = vector.load %arg1[%c0_16, %c0_17, %c21] : memref<1x4x399xf32, #tpu.memory_space<vmem>>, vector<1x4x342xf32>
    %16 = vector.shape_cast %15 : vector<1x4x342xf32> to vector<4x342xf32>
    %c20_18 = arith.constant 20 : index
    %c0_19 = arith.constant 0 : index
    %17 = vector.load %arg8[%c20_18, %c0_19] : memref<36x384xf32, #tpu.memory_space<vmem>>, vector<4x342xf32>
    tpu.vector_store %arg8[%c20_18, %c0_19], %16 {strides = array<i32>} : memref<36x384xf32, #tpu.memory_space<vmem>>, vector<4x342xf32>,
    %c0_20 = arith.constant 0 : index
    %c0_21 = arith.constant 0 : index
    %c38 = arith.constant 38 : index
    %18 = vector.load %arg1[%c0_20, %c0_21, %c38] : memref<1x4x399xf32, #tpu.memory_space<vmem>>, vector<1x4x342xf32>
    %19 = vector.shape_cast %18 : vector<1x4x342xf32> to vector<4x342xf32>
    %c24 = arith.constant 24 : index
    %c0_22 = arith.constant 0 : index
    %20 = vector.load %arg8[%c24, %c0_22] : memref<36x384xf32, #tpu.memory_space<vmem>>, vector<4x342xf32>
    tpu.vector_store %arg8[%c24, %c0_22], %19 {strides = array<i32>} : memref<36x384xf32, #tpu.memory_space<vmem>>, vector<4x342xf32>,
    %c0_23 = arith.constant 0 : index
    %c0_24 = arith.constant 0 : index
    %c39 = arith.constant 39 : index
    %21 = vector.load %arg1[%c0_23, %c0_24, %c39] : memref<1x4x399xf32, #tpu.memory_space<vmem>>, vector<1x4x342xf32>
    %22 = vector.shape_cast %21 : vector<1x4x342xf32> to vector<4x342xf32>
    %c28 = arith.constant 28 : index
    %c0_25 = arith.constant 0 : index
    %23 = vector.load %arg8[%c28, %c0_25] : memref<36x384xf32, #tpu.memory_space<vmem>>, vector<4x342xf32>
    tpu.vector_store %arg8[%c28, %c0_25], %22 {strides = array<i32>} : memref<36x384xf32, #tpu.memory_space<vmem>>, vector<4x342xf32>,
    %c0_26 = arith.constant 0 : index
    %c0_27 = arith.constant 0 : index
    %c40 = arith.constant 40 : index
    %24 = vector.load %arg1[%c0_26, %c0_27, %c40] : memref<1x4x399xf32, #tpu.memory_space<vmem>>, vector<1x4x342xf32>
    %25 = vector.shape_cast %24 : vector<1x4x342xf32> to vector<4x342xf32>
    %c32 = arith.constant 32 : index
    %c0_28 = arith.constant 0 : index
    %26 = vector.load %arg8[%c32, %c0_28] : memref<36x384xf32, #tpu.memory_space<vmem>>, vector<4x342xf32>
    tpu.vector_store %arg8[%c32, %c0_28], %25 {strides = array<i32>} : memref<36x384xf32, #tpu.memory_space<vmem>>, vector<4x342xf32>,
    %c0_29 = arith.constant 0 : index
    %c0_30 = arith.constant 0 : index
    %27 = vector.load %arg2[%c0_29, %c0_30] : memref<32x36xf32, #tpu.memory_space<vmem>>, vector<32x36xf32>
    %c0_31 = arith.constant 0 : index
    %c0_32 = arith.constant 0 : index
    %28 = vector.load %arg8[%c0_31, %c0_32] : memref<36x384xf32, #tpu.memory_space<vmem>>, vector<36x384xf32>
    %cst = arith.constant dense<0.000000e+00> : vector<32x384xf32>
    %29 = tpu.matmul %27, %28, %cst {dimension_numbers = #tpu.dot_dimension_numbers<[1], [0], [0], [1], [0, 0, 1, 1], [], []>} : vector<32x36xf32>, vector<36x384xf32>, vector<32x384xf32> -> vector<32x384xf32>
    %c0_33 = arith.constant 0 : index
    %c0_34 = arith.constant 0 : index
    %30 = vector.load %arg3[%c0_33, %c0_34] : memref<32x1xf32, #tpu.memory_space<vmem>>, vector<32x1xf32>
    %31 = vector.broadcast %30 : vector<32x1xf32> to vector<32x384xf32>
    %32 = arith.addf %29, %31 : vector<32x384xf32>
    %cst_35 = arith.constant 0.000000e+00 : f32
    %33 = vector.broadcast %cst_35 : f32 to vector<32x384xf32>
    %34 = arith.maximumf %32, %33 : vector<32x384xf32>
    %c0_36 = arith.constant 0 : index
    %c0_37 = arith.constant 0 : index
    %35 = vector.load %arg6[%c0_36, %c0_37] : memref<1x384xf32, #tpu.memory_space<vmem>>, vector<1x384xf32>
    %cst_38 = arith.constant 0.000000e+00 : f32
    %36 = vector.broadcast %cst_38 : f32 to vector<1x384xf32>
    %37 = arith.cmpf one, %35, %36 : vector<1x384xf32>
    %cst_39 = arith.constant 0.000000e+00 : f32
    %38 = vector.shape_cast %37 : vector<1x384xi1> to vector<1x384xi1>
    %39 = vector.broadcast %38 : vector<1x384xi1> to vector<32x384xi1>
    %40 = vector.broadcast %cst_39 : f32 to vector<32x384xf32>
    %41 = arith.select %39, %34, %40 : vector<32x384xi1>, vector<32x384xf32>
    %c0_40 = arith.constant 0 : index
    %c128 = arith.constant 128 : index
    %42 = vector.load %arg9[%c0_40, %c128] : memref<32x640xf32, #tpu.memory_space<vmem>>, vector<32x384xf32>
    tpu.vector_store %arg9[%c0_40, %c128], %41 {strides = array<i32>} : memref<32x640xf32, #tpu.memory_space<vmem>>, vector<32x384xf32>,
    %cst_41 = arith.constant 0.000000e+00 : f32
    %43 = vector.broadcast %cst_41 : f32 to vector<1x384xf32>
    %c0_42 = arith.constant 0 : index
    %c0_43 = arith.constant 0 : index
    %c0_44 = arith.constant 0 : index
    %44 = vector.load %arg4[%c0_42, %c0_43, %c0_44] : memref<9x1x32xf32, #tpu.memory_space<vmem>>, vector<1x1x32xf32>
    %45 = vector.shape_cast %44 : vector<1x1x32xf32> to vector<1x32xf32>
    %c0_45 = arith.constant 0 : index
    %c108 = arith.constant 108 : index
    %46 = vector.load %arg9[%c0_45, %c108] : memref<32x640xf32, #tpu.memory_space<vmem>>, vector<32x384xf32>
    %cst_46 = arith.constant dense<0.000000e+00> : vector<1x384xf32>
    %47 = tpu.matmul %45, %46, %cst_46 {dimension_numbers = #tpu.dot_dimension_numbers<[1], [0], [0], [1], [0, 0, 1, 1], [], []>} : vector<1x32xf32>, vector<32x384xf32>, vector<1x384xf32> -> vector<1x384xf32>
    %48 = arith.addf %43, %47 : vector<1x384xf32>
    %c1_47 = arith.constant 1 : index
    %c0_48 = arith.constant 0 : index
    %c0_49 = arith.constant 0 : index
    %49 = vector.load %arg4[%c1_47, %c0_48, %c0_49] : memref<9x1x32xf32, #tpu.memory_space<vmem>>, vector<1x1x32xf32>
    %50 = vector.shape_cast %49 : vector<1x1x32xf32> to vector<1x32xf32>
    %c0_50 = arith.constant 0 : index
    %c109 = arith.constant 109 : index
    %51 = vector.load %arg9[%c0_50, %c109] : memref<32x640xf32, #tpu.memory_space<vmem>>, vector<32x384xf32>
    %cst_51 = arith.constant dense<0.000000e+00> : vector<1x384xf32>
    %52 = tpu.matmul %50, %51, %cst_51 {dimension_numbers = #tpu.dot_dimension_numbers<[1], [0], [0], [1], [0, 0, 1, 1], [], []>} : vector<1x32xf32>, vector<32x384xf32>, vector<1x384xf32> -> vector<1x384xf32>
    %53 = arith.addf %48, %52 : vector<1x384xf32>
    %c2_52 = arith.constant 2 : index
    %c0_53 = arith.constant 0 : index
    %c0_54 = arith.constant 0 : index
    %54 = vector.load %arg4[%c2_52, %c0_53, %c0_54] : memref<9x1x32xf32, #tpu.memory_space<vmem>>, vector<1x1x32xf32>
    %55 = vector.shape_cast %54 : vector<1x1x32xf32> to vector<1x32xf32>
    %c0_55 = arith.constant 0 : index
    %c110 = arith.constant 110 : index
    %56 = vector.load %arg9[%c0_55, %c110] : memref<32x640xf32, #tpu.memory_space<vmem>>, vector<32x384xf32>
    %cst_56 = arith.constant dense<0.000000e+00> : vector<1x384xf32>
    %57 = tpu.matmul %55, %56, %cst_56 {dimension_numbers = #tpu.dot_dimension_numbers<[1], [0], [0], [1], [0, 0, 1, 1], [], []>} : vector<1x32xf32>, vector<32x384xf32>, vector<1x384xf32> -> vector<1x384xf32>
    %58 = arith.addf %53, %57 : vector<1x384xf32>
    %c3 = arith.constant 3 : index
    %c0_57 = arith.constant 0 : index
    %c0_58 = arith.constant 0 : index
    %59 = vector.load %arg4[%c3, %c0_57, %c0_58] : memref<9x1x32xf32, #tpu.memory_space<vmem>>, vector<1x1x32xf32>
    %60 = vector.shape_cast %59 : vector<1x1x32xf32> to vector<1x32xf32>
    %c0_59 = arith.constant 0 : index
    %c127 = arith.constant 127 : index
    %61 = vector.load %arg9[%c0_59, %c127] : memref<32x640xf32, #tpu.memory_space<vmem>>, vector<32x384xf32>
    %cst_60 = arith.constant dense<0.000000e+00> : vector<1x384xf32>
    %62 = tpu.matmul %60, %61, %cst_60 {dimension_numbers = #tpu.dot_dimension_numbers<[1], [0], [0], [1], [0, 0, 1, 1], [], []>} : vector<1x32xf32>, vector<32x384xf32>, vector<1x384xf32> -> vector<1x384xf32>
    %63 = arith.addf %58, %62 : vector<1x384xf32>
    %c4_61 = arith.constant 4 : index
    %c0_62 = arith.constant 0 : index
    %c0_63 = arith.constant 0 : index
    %64 = vector.load %arg4[%c4_61, %c0_62, %c0_63] : memref<9x1x32xf32, #tpu.memory_space<vmem>>, vector<1x1x32xf32>
    %65 = vector.shape_cast %64 : vector<1x1x32xf32> to vector<1x32xf32>
    %c0_64 = arith.constant 0 : index
    %c128_65 = arith.constant 128 : index
    %66 = vector.load %arg9[%c0_64, %c128_65] : memref<32x640xf32, #tpu.memory_space<vmem>>, vector<32x384xf32>
    %cst_66 = arith.constant dense<0.000000e+00> : vector<1x384xf32>
    %67 = tpu.matmul %65, %66, %cst_66 {dimension_numbers = #tpu.dot_dimension_numbers<[1], [0], [0], [1], [0, 0, 1, 1], [], []>} : vector<1x32xf32>, vector<32x384xf32>, vector<1x384xf32> -> vector<1x384xf32>
    %68 = arith.addf %63, %67 : vector<1x384xf32>
    %c5 = arith.constant 5 : index
    %c0_67 = arith.constant 0 : index
    %c0_68 = arith.constant 0 : index
    %69 = vector.load %arg4[%c5, %c0_67, %c0_68] : memref<9x1x32xf32, #tpu.memory_space<vmem>>, vector<1x1x32xf32>
    %70 = vector.shape_cast %69 : vector<1x1x32xf32> to vector<1x32xf32>
    %c0_69 = arith.constant 0 : index
    %c129 = arith.constant 129 : index
    %71 = vector.load %arg9[%c0_69, %c129] : memref<32x640xf32, #tpu.memory_space<vmem>>, vector<32x384xf32>
    %cst_70 = arith.constant dense<0.000000e+00> : vector<1x384xf32>
    %72 = tpu.matmul %70, %71, %cst_70 {dimension_numbers = #tpu.dot_dimension_numbers<[1], [0], [0], [1], [0, 0, 1, 1], [], []>} : vector<1x32xf32>, vector<32x384xf32>, vector<1x384xf32> -> vector<1x384xf32>
    %73 = arith.addf %68, %72 : vector<1x384xf32>
    %c6 = arith.constant 6 : index
    %c0_71 = arith.constant 0 : index
    %c0_72 = arith.constant 0 : index
    %74 = vector.load %arg4[%c6, %c0_71, %c0_72] : memref<9x1x32xf32, #tpu.memory_space<vmem>>, vector<1x1x32xf32>
    %75 = vector.shape_cast %74 : vector<1x1x32xf32> to vector<1x32xf32>
    %c0_73 = arith.constant 0 : index
    %c146 = arith.constant 146 : index
    %76 = vector.load %arg9[%c0_73, %c146] : memref<32x640xf32, #tpu.memory_space<vmem>>, vector<32x384xf32>
    %cst_74 = arith.constant dense<0.000000e+00> : vector<1x384xf32>
    %77 = tpu.matmul %75, %76, %cst_74 {dimension_numbers = #tpu.dot_dimension_numbers<[1], [0], [0], [1], [0, 0, 1, 1], [], []>} : vector<1x32xf32>, vector<32x384xf32>, vector<1x384xf32> -> vector<1x384xf32>
    %78 = arith.addf %73, %77 : vector<1x384xf32>
    %c7 = arith.constant 7 : index
    %c0_75 = arith.constant 0 : index
    %c0_76 = arith.constant 0 : index
    %79 = vector.load %arg4[%c7, %c0_75, %c0_76] : memref<9x1x32xf32, #tpu.memory_space<vmem>>, vector<1x1x32xf32>
    %80 = vector.shape_cast %79 : vector<1x1x32xf32> to vector<1x32xf32>
    %c0_77 = arith.constant 0 : index
    %c147 = arith.constant 147 : index
    %81 = vector.load %arg9[%c0_77, %c147] : memref<32x640xf32, #tpu.memory_space<vmem>>, vector<32x384xf32>
    %cst_78 = arith.constant dense<0.000000e+00> : vector<1x384xf32>
    %82 = tpu.matmul %80, %81, %cst_78 {dimension_numbers = #tpu.dot_dimension_numbers<[1], [0], [0], [1], [0, 0, 1, 1], [], []>} : vector<1x32xf32>, vector<32x384xf32>, vector<1x384xf32> -> vector<1x384xf32>
    %83 = arith.addf %78, %82 : vector<1x384xf32>
    %c8_79 = arith.constant 8 : index
    %c0_80 = arith.constant 0 : index
    %c0_81 = arith.constant 0 : index
    %84 = vector.load %arg4[%c8_79, %c0_80, %c0_81] : memref<9x1x32xf32, #tpu.memory_space<vmem>>, vector<1x1x32xf32>
    %85 = vector.shape_cast %84 : vector<1x1x32xf32> to vector<1x32xf32>
    %c0_82 = arith.constant 0 : index
    %c148 = arith.constant 148 : index
    %86 = vector.load %arg9[%c0_82, %c148] : memref<32x640xf32, #tpu.memory_space<vmem>>, vector<32x384xf32>
    %cst_83 = arith.constant dense<0.000000e+00> : vector<1x384xf32>
    %87 = tpu.matmul %85, %86, %cst_83 {dimension_numbers = #tpu.dot_dimension_numbers<[1], [0], [0], [1], [0, 0, 1, 1], [], []>} : vector<1x32xf32>, vector<32x384xf32>, vector<1x384xf32> -> vector<1x384xf32>
    %88 = arith.addf %83, %87 : vector<1x384xf32>
    %c0_84 = arith.constant 0 : index
    %c0_85 = arith.constant 0 : index
    %89 = vector.load %arg5[%c0_84, %c0_85] : memref<1x1xf32, #tpu.memory_space<vmem>>, vector<1x1xf32>
    %90 = vector.broadcast %89 : vector<1x1xf32> to vector<1x384xf32>
    %91 = arith.addf %88, %90 : vector<1x384xf32>
    %c0_86 = arith.constant 0 : index
    %c0_87 = arith.constant 0 : index
    %c0_88 = arith.constant 0 : index
    %92 = vector.load %arg7[%c0_86, %c0_87, %c0_88] : memref<1x1x384xf32, #tpu.memory_space<vmem>>, vector<1x1x384xf32>
    %93 = vector.shape_cast %92 : vector<1x1x384xf32> to vector<1x384xf32>
    %94 = vector.shape_cast %91 : vector<1x384xf32> to vector<1x1x384xf32>
    tpu.vector_store %arg7[%c0_86, %c0_87, %c0_88], %94 {strides = array<i32>} : memref<1x1x384xf32, #tpu.memory_space<vmem>>, vector<1x1x384xf32>,
    return
  }
  func.func @transform_0(%arg0: i32) -> (i32, i32, i32) {
    %c0_i32 = arith.constant 0 : i32
    %c0_i32_0 = arith.constant 0 : i32
    %c0_i32_1 = arith.constant 0 : i32
    return %arg0, %c0_i32, %c0_i32_0 : i32, i32, i32
  }
  func.func @transform_1(%arg0: i32) -> (i32, i32) {
    %c0_i32 = arith.constant 0 : i32
    %c0_i32_0 = arith.constant 0 : i32
    %c0_i32_1 = arith.constant 0 : i32
    return %c0_i32, %c0_i32_0 : i32, i32
  }
  func.func @transform_2(%arg0: i32) -> (i32, i32) {
    %c0_i32 = arith.constant 0 : i32
    %c0_i32_0 = arith.constant 0 : i32
    %c0_i32_1 = arith.constant 0 : i32
    return %c0_i32, %c0_i32_0 : i32, i32
  }
  func.func @transform_3(%arg0: i32) -> (i32, i32, i32) {
    %c0_i32 = arith.constant 0 : i32
    %c0_i32_0 = arith.constant 0 : i32
    %c0_i32_1 = arith.constant 0 : i32
    %c0_i32_2 = arith.constant 0 : i32
    return %c0_i32, %c0_i32_0, %c0_i32_1 : i32, i32, i32
  }
  func.func @transform_4(%arg0: i32) -> (i32, i32) {
    %c0_i32 = arith.constant 0 : i32
    %c0_i32_0 = arith.constant 0 : i32
    %c0_i32_1 = arith.constant 0 : i32
    return %c0_i32, %c0_i32_0 : i32, i32
  }
  func.func @transform_5(%arg0: i32) -> (i32, i32) {
    %c0_i32 = arith.constant 0 : i32
    %c0_i32_0 = arith.constant 0 : i32
    %c0_i32_1 = arith.constant 0 : i32
    return %c0_i32, %c0_i32_0 : i32, i32
  }
  func.func @transform_6(%arg0: i32) -> (i32, i32, i32) {
    %c0_i32 = arith.constant 0 : i32
    %c0_i32_0 = arith.constant 0 : i32
    %c0_i32_1 = arith.constant 0 : i32
    return %arg0, %c0_i32, %c0_i32_0 : i32, i32, i32
  }
}

</mosaic_0001>

<bundles_post_ra>
// kernel: seg_head_forward.1
= control target key start
LH: loop header
LB: loop body
LE: loop exit
PB: predicated region body
PF: predicated region fallthrough
CT: control target
= control target key end

     0   :  { %s3481_s23 = smov 0   ;;  %s4263_s0 = inlined_call_operand.vmem [shape: f32[2,4,399], index: 0, kind: input, shape index: {}]   ;;  %s4264_s1 = inlined_call_operand.vmem [shape: f32[32,36], index: 1, kind: input, shape index: {}]   ;;  %s4265_s2 = inlined_call_operand.vmem [shape: f32[32,1], index: 2, kind: input, shape index: {}]   ;;  %s4266_s3 = inlined_call_operand.vmem [shape: f32[9,1,32], index: 3, kind: input, shape index: {}]   ;;  %s4267_s4 = inlined_call_operand.<no memory space> [shape: f32[1,1], index: 4, kind: input, shape index: {}]   ;;  %s4268_s5 = inlined_call_operand.vmem [shape: f32[1,384], index: 5, kind: input, shape index: {}]   ;;  %s4269_s6 = inlined_call_operand.vmem [shape: f32[2,1,384], index: 6, kind: output, shape index: {}]  }
   0x1   :  { %v11_v0 = vstv %s4267_s4 }
   0x2   :  { %12 = vst [vmem:[#allocation4] sm:$0x1] %v11_v0 }
   0x3 LB: > { %s2670_s24 = sadd.s32 4294967295, %s3423_s23   ;;  %p2674_p0 = scmp.ge.s32.totalorder %s3423_s23, 1  ;;  %s3423_s23 = sphi %s3481_s23, %s18_s23  }
   0x4   : > { %p214_p1 = scmp.lt.s32.totalorder %s3423_s23, 3 }
   0x6   : > { %p215_p2 = pnand %p2674_p0, %p214_p1 }
   0x8   : > { %218 = sbr.rel (%p215_p2) target bundleno = 876 (0x36c), region = 44 }
   0xf   : > { %p243_p3 = scmp.lt.s32.totalorder %s2670_s24, 1  ;;  %s3425_s28 = smov 126   ;;  %vm259_vm0 = vcmask 699392   ;;  %v3519_v12 = vld [vmem:[%s4264_s1] sm:$0xff]  ;;  %vm469_vm1 = vcmask 293888   ;;  %v4284_v14 = vmov 0.0  }
  0x10   : > { %s3426_s29 = smov 127   ;;  %s3427_s30 = smov 109   ;;  %2781 = vmatprep.mubr.msk.f32.mxu1 %vm469_vm1, %v3519_v12  ;;  %556 = vmatprep.mubr.f32.mxu0 %v4284_v14  ;;  %v446_v15 = vld [vmem:[%s4265_s2 + $0x8] sm:$0xff]  ;;  %v445_v16 = vld [vmem:[%s4265_s2] sm:$0xff]  ;;  %v3434_v17 = vmov 0   ;;  %v447_v18 = vld [vmem:[%s4265_s2 + $0x10] sm:$0xff] }
  0x11   : > { %s4334_s24 = smov (!%p243_p3, %s2670_s24), 1  ;;  %s3428_s7 = smov 108   ;;  %3072 = vset.pattern.permute.xlu1 %v3434_v17  ;;  %3071 = vset.pattern.permute.xlu0 %v3434_v17  ;;  %v448_v19 = vld [vmem:[%s4265_s2 + $0x18] sm:$0xff]  ;;  %v725_v21 = vld [vmem:[#allocation3 + $0x28] sm:$0xff]  ;;  %v729_v23 = vld [vmem:[#allocation3 + $0x50] sm:$0xff]  ;;  %vm294_vm2 = vcmask 1031168  }
  0x12   : > { %s2716_s4 = sshll.u32 %s4334_s24, 4  ;;  %s3429_s8 = smov 107   ;;  %v721_v20 = vld [vmem:[#allocation3] sm:$0xff]  ;;  %v733_v24 = vld [vmem:[#allocation3 + $0x78] sm:$0xff]  ;;  %vm281_vm3 = vcmask 703492   ;;  %vm315_vm4 = vcmask 891904  }
  0x13   : > { %s3495_s27 = scalar_lea.vmem %s4263_s0, %s2716_s4  ;;  %s3430_s9 = smov 90   ;;  %v3539_v22 = vpack.i.bf16 %v725_v21, %v721_v20  ;;  %v3543_v25 = vpack.i.bf16 %v733_v24, %v729_v23  ;;  %vm273_vm5 = vcmask 1039360   ;;  %vm335_vm6 = vcmask 883712  }
  0x14   : > { %v284_v1 = vld [vmem:[%s3495_s27 + $0x8] sm:$0xf]  ;;  %v261_v2 = vld [vmem:[%s3495_s27] sm:$0xff]  ;;  %s3431_s10 = smov 89   ;;  %s3432_s13 = smov 88   ;;  %vm356_vm7 = vcmask 875520  }
  0x15   : > { %292 = vrot.lane.b32.xlu1 %v284_v1, %s3425_s28  ;;  %269 = vrot.lane.b32.xlu0 %v261_v2, %s3426_s29  ;;  %v287_v3 = vcombine.high %v261_v2, %v261_v2  ;;  %257 = vst [vmem:[#allocation2] sm:$0xf] %v261_v2  ;;  %v253_v4 = vld [vmem:[%s3495_s27 + $0x8] sm:$0xf]  ;;  %v265_v7 = vcombine.low %v261_v2, %v261_v2  ;;  %s3435_s22 = smov 19   ;;  %s3436_s4 = smov 20  }
  0x16   : > { %v3395_v5 = vld [vmem:[%s3495_s27 + $0x8] ss:$0 sps:$4 sm:$0xff]   ;;  %260 = vst.msk [vmem:[#allocation2 + $0x10] sm:$0xf] %vm259_vm0, %v253_v4  ;;  %vm376_vm8 = vcmask 736256   ;;  %vm397_vm9 = vcmask 728064  }
  0x17   : > { %258 = vst [vmem:[#allocation2 + $0x8] sm:$0xf] %v287_v3  ;;  %v3396_v6 = vld [vmem:[%s3495_s27 + $0x8] ss:$0 sps:$4 sm:$0xff]   ;;  %vm417_vm10 = vcmask 719872   ;;  %vm482_vm11 = vcmask 1043456  }
  0x18   : > { %v325_v8 = vld [vmem:[%s3495_s27 + $0x8] sm:$0xf]  ;;  %s3438_s11 = smov 1   ;;  %s3441_s14 = smov 110  }
  0x19   : > { %290 = vrot.lane.b32.xlu1 %v287_v3, %s3425_s28  ;;  %311 = vrot.lane.b32.xlu0 %v261_v2, %s3427_s30  ;;  %v3397_v9 = vld [vmem:[%s3495_s27 + $0x8] ss:$0 sps:$4 sm:$0xff]  }
  0x1a   : > { %v366_v10 = vld [vmem:[%s3495_s27 + $0x8] sm:$0xf] }
  0x1b   : > { %v3398_v11 = vld [vmem:[%s3495_s27 + $0x8] ss:$0 sps:$4 sm:$0xff]  }
  0x1c   : > { %v407_v13 = vld [vmem:[%s3495_s27 + $0x8] sm:$0xf] }
  0x1d   : > { %313 = vrot.lane.b32.xlu1 %v3395_v5, %s3427_s30  ;;  %271 = vrot.lane.b32.xlu0 %v3396_v6, %s3426_s29 }
  0x21   : > { %267 = vrot.lane.b32.xlu0 %v265_v7, %s3426_s29  ;;  %288 = vrot.lane.b32.xlu1 %v261_v2, %s3425_s28 }
  0x25   : > { %309 = vrot.lane.b32.xlu0 %v265_v7, %s3427_s30  ;;  %331 = vrot.lane.b32.xlu1 %v287_v3, %s3428_s7 }
  0x29   : > { %333 = vrot.lane.b32.xlu0 %v325_v8, %s3428_s7  ;;  %352 = vrot.lane.b32.xlu1 %v261_v2, %s3429_s8 }
  0x2d   : > { %354 = vrot.lane.b32.xlu0 %v3397_v9, %s3429_s8  ;;  %372 = vrot.lane.b32.xlu1 %v287_v3, %s3430_s9 }
  0x31   : > { %374 = vrot.lane.b32.xlu0 %v366_v10, %s3430_s9  ;;  %393 = vrot.lane.b32.xlu1 %v261_v2, %s3431_s10 }
  0x35   : > { %395 = vrot.lane.b32.xlu0 %v3398_v11, %s3431_s10  ;;  %329 = vrot.lane.b32.xlu1 %v261_v2, %s3428_s7 }
  0x39   : > { %350 = vrot.lane.b32.xlu0 %v265_v7, %s3429_s8  ;;  %370 = vrot.lane.b32.xlu1 %v261_v2, %s3430_s9 }
  0x3d   : > { %391 = vrot.lane.b32.xlu0 %v265_v7, %s3431_s10  ;;  %413 = vrot.lane.b32.xlu1 %v287_v3, %s3432_s13  ;;  %s3437_s10 = smov 18  }
  0x41   : > { %415 = vrot.lane.b32.xlu0 %v407_v13, %s3432_s13  ;;  %411 = vrot.lane.b32.xlu1 %v261_v2, %s3432_s13 }
  0x45   : > { %456 = vperm.xlu1 %3072, %v446_v15   ;;  %451 = vperm.xlu0 %3071, %v445_v16  }
  0x49   : > { %461 = vperm.xlu1 %3072, %v447_v18   ;;  %466 = vperm.xlu0 %3071, %v448_v19  }
  0x4d   : > { %3074 = vrot.lane.b32.xlu1 %v3539_v22, %s3435_s22 }
  0x51   : > { %3079 = vrot.lane.b32.xlu1 %v3543_v25, %s3435_s22 }
  0x55   : > { %3084 = vrot.lane.b32.xlu1 %v3539_v22, %s3436_s4 }
  0x59   : > { %3089 = vrot.lane.b32.xlu1 %v3543_v25, %s3436_s4 }
  0x5d   : > { %3094 = vrot.lane.b32.xlu1 %v3539_v22, %s3437_s10 }
  0x61   : > { %3099 = vrot.lane.b32.xlu1 %v3543_v25, %s3437_s10 }
  0x65   : > { %3104 = vrot.lane.b32.xlu1 %v3539_v22, %s3438_s11 }
  0x69   : > { %3109 = vrot.lane.b32.xlu1 %v3543_v25, %s3438_s11 }
  0x87   : > { %v293_v26 = vpop.permute.xlu1 %292  ;;  %v270_v27 = vpop.permute.xlu0 %269 }
  0x88   : > { %302 = vst.msk [vmem:[#allocation2 + $0x28] sm:$0xf] %vm259_vm0, %v293_v26 }
  0x8b   : > { %v291_v28 = vpop.permute.xlu1 %290  ;;  %v312_v29 = vpop.permute.xlu0 %311 }
  0x8c   : > { %v296_v30 = vsel %vm294_vm2, %v291_v28, %v293_v26  ;;  %v427_v26 = vld [vmem:[%s4264_s1 + $0x8] sm:$0xff] }
  0x8d   : > { %301 = vst [vmem:[#allocation2 + $0x20] sm:$0xf] %v296_v30  ;;  %v429_v30 = vld [vmem:[%s4264_s1 + $0x18] sm:$0xff] }
  0x8f   : > { %v314_v31 = vpop.permute.xlu1 %313  ;;  %v272_v32 = vpop.permute.xlu0 %271 }
  0x90   : > { %v317_v33 = vsel %vm315_vm4, %v312_v29, %v314_v31  ;;  %323 = vst.msk [vmem:[#allocation2 + $0x28] sm:$0xf0] %vm281_vm3, %v314_v31  ;;  %v275_v34 = vsel %vm273_vm5, %v270_v27, %v272_v32  ;;  %282 = vst.msk [vmem:[#allocation2 + $0x10] sm:$0xf0] %vm281_vm3, %v272_v32  ;;  %v1728_v31 = vld [vmem:[#allocation3 + $0x48] sm:$0xff] }
  0x91   : > { %322 = vst [vmem:[#allocation2 + $0x20] sm:$0xf0] %v317_v33  ;;  %280 = vst [vmem:[#allocation2 + $0x8] sm:$0xf0] %v275_v34  ;;  %v4270_v33 = vlaneseq  ;;  %v678_v34 = vld [vmem:[%s4268_s5] sm:$0x7] }
  0x92   : > { %vm679_vm12 = vcmp.ne.f32.partialorder %v678_v34, 0.0 }
  0x93   : > { %v268_v35 = vpop.permute.xlu0 %267  ;;  %v289_v36 = vpop.permute.xlu1 %288  ;;  %v680_v22 = vsel %vm679_vm12, 1, %v3434_v17 }
  0x94   : > { %v274_v37 = vsel %vm273_vm5, %v268_v35, %v270_v27  ;;  %v295_v38 = vsel %vm294_vm2, %v289_v36, %v291_v28  ;;  %v3610_v35 = vshrl.u32 %v4270_v33, 7  ;;  %vm989_vm2 = vcmask 162816  }
  0x95   : > { %279 = vst [vmem:[#allocation2] sm:$0xf0] %v274_v37  ;;  %300 = vst [vmem:[#allocation2 + $0x18] sm:$0xf] %v295_v38 }
  0x96   : > { %4295 = vst [vmem:[#allocation5_spill] sm:$0xff] %v3610_v35  ;;  %v691_v36 = vsub.s32 2, %v3610_v35  ;;  %v4271_v37 = vsub.s32 0, %v3610_v35  ;;  %v687_v38 = vsub.s32 1, %v3610_v35 }
  0x97   : > { %v310_v39 = vpop.permute.xlu0 %309  ;;  %v332_v40 = vpop.permute.xlu1 %331  ;;  %v432_v41 = vld [vmem:[#allocation2 + $0x10] sm:$0xff]  ;;  %v435_v42 = vld [vmem:[#allocation2 + $0x28] sm:$0xff] }
  0x98   : > { %v316_v43 = vsel %vm315_vm4, %v310_v39, %v312_v29  ;;  %v2894_v44 = vpack.c.bf16 %v435_v42, %v432_v41  ;;  %v431_v45 = vld [vmem:[#allocation2 + $0x8] sm:$0xff]  ;;  %v434_v46 = vld [vmem:[#allocation2 + $0x20] sm:$0xff]  ;;  %v428_v29 = vld [vmem:[%s4264_s1 + $0x10] sm:$0xff]  ;;  %v3616_v39 = vrot.slane %v680_v22, %v691_v36 }
  0x99   : > { %321 = vst [vmem:[#allocation2 + $0x18] sm:$0xf0] %v316_v43  ;;  %v2886_v47 = vpack.c.bf16 %v434_v46, %v431_v45  ;;  %v1736_v41 = vld [vmem:[#allocation3 + $0x98] sm:$0xff]  ;;  %v3624_v46 = vrot.slane %v680_v22, %v687_v38 }
  0x9a   : > { %2895 = vmatprep.subr.bf16.mxu1 %v2894_v44  ;;  %vm695_vm13 = vcmp.eq.s32.totalorder %v3616_v39, 1 }
  0x9b   : > { %v334_v48 = vpop.permute.xlu0 %333  ;;  %2887 = vmatprep.subr.bf16.mxu0 %v2886_v47  ;;  %2897 = vmatpush3.bf16.msra.mxu1 %v2894_v44  ;;  %v353_v49 = vpop.permute.xlu1 %352  ;;  %v3622_v44 = vrot.slane %v680_v22, %v4271_v37  ;;  %vm694_vm15 = vcmp.eq.s32.totalorder %v3624_v46, 1 }
  0x9c   : > { %v337_v50 = vsel %vm335_vm6, %v332_v40, %v334_v48  ;;  %343 = vst.msk [vmem:[#allocation2 + $0x40] sm:$0xf] %vm259_vm0, %v334_v48  ;;  %v430_v54 = vld [vmem:[#allocation2] sm:$0xff] }
  0x9d   : > { %342 = vst [vmem:[#allocation2 + $0x38] sm:$0xf] %v337_v50  ;;  %vm693_vm14 = vcmp.eq.s32.totalorder %v3622_v44, 1 }
  0x9e   : > { %vm4080_vm12 = vmpackc.low %vm693_vm14, %vm693_vm14 }
  0x9f   : > { %v355_v51 = vpop.permute.xlu0 %354  ;;  %v373_v52 = vpop.permute.xlu1 %372 }
  0xa0   : > { %v358_v53 = vsel %vm356_vm7, %v353_v49, %v355_v51  ;;  %364 = vst.msk [vmem:[#allocation2 + $0x40] sm:$0xf0] %vm281_vm3, %v355_v51  ;;  %v433_v55 = vld [vmem:[#allocation2 + $0x18] sm:$0xff] }
  0xa1   : > { %363 = vst [vmem:[#allocation2 + $0x38] sm:$0xf0] %v358_v53  ;;  %v2888_v56 = vpack.c.bf16 %v433_v55, %v430_v54 }
  0xa3   : > { %v375_v57 = vpop.permute.xlu0 %374  ;;  %2889 = vmatpush1.bf16.msra.mxu0 %v2888_v56  ;;  %v394_v58 = vpop.permute.xlu1 %393 }
  0xa4   : > { %v378_v59 = vsel %vm376_vm8, %v373_v52, %v375_v57  ;;  %384 = vst.msk [vmem:[#allocation2 + $0x58] sm:$0xf] %vm259_vm0, %v375_v57 }
  0xa5   : > { %383 = vst [vmem:[#allocation2 + $0x50] sm:$0xf] %v378_v59 }
  0xa7   : > { %v396_v60 = vpop.permute.xlu0 %395  ;;  %v330_v61 = vpop.permute.xlu1 %329  ;;  %v438_v6 = vld [vmem:[#allocation2 + $0x40] sm:$0xff] }
  0xa8   : > { %v399_v62 = vsel %vm397_vm9, %v394_v58, %v396_v60  ;;  %405 = vst.msk [vmem:[#allocation2 + $0x58] sm:$0xf0] %vm281_vm3, %v396_v60  ;;  %v336_v63 = vsel %vm335_vm6, %v330_v61, %v332_v40  ;;  %v437_v10 = vld [vmem:[#allocation2 + $0x38] sm:$0xff]  ;;  %v1732_v40 = vld [vmem:[#allocation3 + $0x70] sm:$0xff]  ;;  %vm812_vm3 = vcmask 261120  }
  0xa9   : > { %404 = vst [vmem:[#allocation2 + $0x50] sm:$0xf0] %v399_v62  ;;  %341 = vst [vmem:[#allocation2 + $0x30] sm:$0xf] %v336_v63  ;;  %v3618_v43 = vpack.i.bf16 %v1736_v41, %v1732_v40 }
  0xab   : > { %v351_v0 = vpop.permute.xlu0 %350  ;;  %v371_v1 = vpop.permute.xlu1 %370 }
  0xac   : > { %v357_v2 = vsel %vm356_vm7, %v351_v0, %v353_v49  ;;  %v377_v3 = vsel %vm376_vm8, %v371_v1, %v373_v52  ;;  %vm1192_vm7 = vcmask 146432   ;;  %vm1398_vm8 = vcmask 7168  }
  0xad   : > { %362 = vst [vmem:[#allocation2 + $0x30] sm:$0xf0] %v357_v2  ;;  %382 = vst [vmem:[#allocation2 + $0x48] sm:$0xf] %v377_v3 }
  0xaf   : > { %v392_v4 = vpop.permute.xlu0 %391  ;;  %v414_v5 = vpop.permute.xlu1 %413  ;;  %v441_v7 = vld [vmem:[#allocation2 + $0x58] sm:$0xff] }
  0xb0   : > { %v398_v8 = vsel %vm397_vm9, %v392_v4, %v394_v58  ;;  %v2898_v9 = vpack.c.bf16 %v441_v7, %v438_v6  ;;  %v440_v11 = vld [vmem:[#allocation2 + $0x50] sm:$0xff]  ;;  %vm4040_vm9 = vmpackc.low %vm694_vm15, %vm694_vm15 }
  0xb1   : > { %403 = vst [vmem:[#allocation2 + $0x48] sm:$0xf0] %v398_v8  ;;  %v2890_v13 = vpack.c.bf16 %v440_v11, %v437_v10 }
  0xb2   : > { %2899 = vmatprep.subr.bf16.mxu1 %v2898_v9 }
  0xb3   : > { %v416_v15 = vpop.permute.xlu0 %415  ;;  %2891 = vmatprep.subr.bf16.mxu0 %v2890_v13  ;;  %2901 = vmatpush3.bf16.msra.mxu1 %v2898_v9  ;;  %v412_v16 = vpop.permute.xlu1 %411 }
  0xb4   : > { %v419_v18 = vsel %vm417_vm10, %v414_v5, %v416_v15  ;;  %425 = vst.msk [vmem:[#allocation2 + $0x70] sm:$0xf] %vm259_vm0, %v416_v15  ;;  %v418_v19 = vsel %vm417_vm10, %v412_v16, %v414_v5  ;;  %v436_v20 = vld [vmem:[#allocation2 + $0x30] sm:$0xff]  ;;  %vm3440_vm0 = vmmov 0   ;;  %vm4056_vm10 = vmpackc.low %vm695_vm13, %vm695_vm13 }
  0xb5   : > { %424 = vst [vmem:[#allocation2 + $0x68] sm:$0xf] %v419_v18  ;;  %423 = vst [vmem:[#allocation2 + $0x60] sm:$0xf] %v418_v19 }
  0xb8   : > { %v439_v21 = vld [vmem:[#allocation2 + $0x48] sm:$0xff] }
  0xb9   : > { %v2892_v23 = vpack.c.bf16 %v439_v21, %v436_v20 }
  0xbb   : > { %2893 = vmatpush1.bf16.msra.mxu0 %v2892_v23  ;;  %v444_v24 = vld [vmem:[#allocation2 + $0x70] sm:$0xf] }
  0xbc   : > { %2779 = vmatprep.subr.msk.mxu1 %vm482_vm11, %v444_v24  ;;  %v443_v27 = vld [vmem:[#allocation2 + $0x68] sm:$0xf]  ;;  %v442_v28 = vld [vmem:[#allocation2 + $0x60] sm:$0xf] }
  0xbd   : > { %2677 = vmatprep.subr.msk.mxu0 %vm482_vm11, %v443_v27  ;;  %2780 = vmatpush3.msk.msra.mxu1 %vm482_vm11, %v444_v24 }
  0xbe   : > { %2782 = vmatmul.mubr.msk.f32.vlgmr.msra.gmra.mrb[0].mxu1 %vm469_vm1, %v427_v26 }
  0xbf   : > { %2678 = vmatpush1.msk.msra.mxu0 %vm482_vm11, %v442_v28  ;;  %2784 = vmatprep.mubr.msk.f32.mxu1 %vm469_vm1, %v428_v29  ;;  %vm1990_vm11 = vcmask 900096  }
  0xc0   : > { %2679 = vmatmul.mubr.msk.f32.vlgmr.msra.gmra.mrb[0].mxu0 %vm469_vm1, %v3519_v12  ;;  %v1724_v12 = vld [vmem:[#allocation3 + $0x20] sm:$0xff] }
  0xc1   : > { %562 = vmatprep.mubr.f32.mxu0 %v4284_v14  ;;  %v3600_v32 = vpack.i.bf16 %v1728_v31, %v1724_v12 }
  0xc2   : > { %2785 = vmatmul.mubr.msk.f32.gmra.mrb[2].mxu1 %vm469_vm1, %v429_v30 }
  0xc3   : > { %880 = vmatprep.mubr.f32.mxu1 %v4284_v14  ;;  %3114 = vrot.lane.b32.xlu0 %v3600_v32, %s3426_s29 }
  0xc4   : > { %2680 = vmatmul.mubr.msk.f32.gmra.mrb[2].mxu0 %vm469_vm1, %v427_v26  ;;  %v452_v25 = vpop.permute.xlu0 %451  ;;  %v457_v42 = vpop.permute.xlu1 %456 }
  0xc5   : > { %568 = vmatprep.mubr.f32.mxu0 %v4284_v14 }
  0xc8   : > { %2681 = vmatmul.mubr.msk.f32.gmra.mrb[4].mxu0 %vm469_vm1, %v428_v29  ;;  %v467_v53 = vpop.permute.xlu0 %466  ;;  %v462_v58 = vpop.permute.xlu1 %461 }
  0xc9   : > { %574 = vmatprep.mubr.f32.mxu0 %v4284_v14 }
  0xcc   : > { %2682 = vmatmul.mubr.msk.f32.gmra.mrb[6].mxu0 %vm469_vm1, %v429_v30  ;;  %vm787_vm1 = vcmask 154624  }
  0xcd   : > { %2795 = vmatprep.mubr.msk.f32.mxu0 %vm3440_vm0, %v4284_v14 }
 0x191   : > { %v2783_v45 = vpop.f32.mrb[0].mxu1 }
 0x192   : > { %v3626_v17 = vadd.f32 %v2783_v45, %v457_v42  ;;  %v647_v47 = vpop.f32.mrb[1].mxu1 }
 0x193   : > { %v3629_v48 = vadd.f32 %v647_v47, %v452_v25  ;;  %v558_v49 = vpop.f32.mrb[0].mxu0 }
 0x194   : > { %v4280_v50 = vmax.f32 %v3626_v17, 0.0  ;;  %v3632_v51 = vadd.f32 %v558_v49, %v452_v25  ;;  %v560_v52 = vpop.f32.mrb[1].mxu0 }
 0x195   : > { %v4281_v54 = vmax.f32 %v3629_v48, 0.0  ;;  %v3636_v55 = vadd.f32 %v560_v52, %v452_v25  ;;  %v2786_v56 = vpop.f32.mrb[2].mxu1 }
 0x196   : > { %v701_v57 = vsel %vm695_vm13, %v4280_v50, 0.0  ;;  %v4279_v59 = vmax.f32 %v3632_v51, 0.0  ;;  %v3644_v60 = vadd.f32 %v2786_v56, %v467_v53  ;;  %v657_v61 = vpop.f32.mrb[3].mxu1 }
 0x197   : > { %v698_v62 = vsel %vm695_vm13, %v4281_v54, 0.0  ;;  %v4283_v63 = vmax.f32 %v3636_v55, 0.0  ;;  %v3651_v0 = vadd.f32 %v657_v61, %v462_v58  ;;  %v564_v1 = vpop.f32.mrb[2].mxu0  ;;  %v3767_v61 = vpop.permute.xlu1 %3074 }
 0x198   : > { %4296 = vst [vmem:[#allocation6_spill] sm:$0xff] %v3644_v60  ;;  %v696_v2 = vsel %vm693_vm14, %v4279_v59, 0.0  ;;  %v4274_v3 = vmax.f32 %v3644_v60, 0.0  ;;  %v3658_v4 = vadd.f32 %v564_v1, %v457_v42  ;;  %v566_v5 = vpop.f32.mrb[3].mxu0  ;;  %v3118_v6 = vpack.i.bf16 %v701_v57, %v698_v62 }
 0x199   : > { %4297 = vst [vmem:[#allocation7_spill] sm:$0xff] %v3651_v0  ;;  %v697_v7 = vsel %vm694_vm15, %v4283_v63, 0.0  ;;  %v4275_v8 = vmax.f32 %v3651_v0, 0.0  ;;  %v3665_v9 = vadd.f32 %v566_v5, %v457_v42  ;;  %v3076_v37 = vunpack.i.l.bf16 %v3767_v61 }
 0x19a   : > { %v707_v10 = vsel %vm695_vm13, %v4274_v3, 0.0  ;;  %v4278_v11 = vmax.f32 %v3658_v4, 0.0  ;;  %3119 = vrot.lane.b32.xlu0 %v3118_v6, %s3435_s22  ;;  %v3138_v13 = vpack.i.bf16 %v697_v7, %v696_v2  ;;  %v3673_v15 = vpack.i.bf16 %v698_v62, %v697_v7 }
 0x19b   : > { %v704_v16 = vsel %vm695_vm13, %v4275_v8, 0.0  ;;  %v4282_v18 = vmax.f32 %v3665_v9, 0.0  ;;  %v570_v19 = vpop.f32.mrb[4].mxu0  ;;  %v3774_v62 = vpop.permute.xlu1 %3079 }
 0x19c   : > { %v699_v20 = vsel %vm693_vm14, %v4278_v11, 0.0  ;;  %v3684_v21 = vadd.f32 %v570_v19, %v462_v58  ;;  %v572_v23 = vpop.f32.mrb[5].mxu0  ;;  %3139 = vrot.lane.b32.xlu1 %v3138_v13, %s3435_s22  ;;  %v3163_v24 = vpack.i.bf16 %v707_v10, %v704_v16 }
 0x19d   : > { %v700_v26 = vsel %vm694_vm15, %v4282_v18, 0.0  ;;  %v3691_v27 = vadd.f32 %v572_v23, %v462_v58  ;;  %v3693_v28 = vpack.i.bf16 %v699_v20, %v696_v2  ;;  %v4286_v58 = vmov 0.0|0.0  }
 0x19e   : > { %4298 = vst [vmem:[#allocation8_spill] sm:$0xff] %v3684_v21  ;;  %v4273_v29 = vmax.f32 %v3684_v21, 0.0  ;;  %3124 = vrot.lane.b32.xlu0 %v3118_v6, %s3436_s4  ;;  %v3188_v30 = vpack.i.bf16 %v700_v26, %v699_v20  ;;  %v3697_v12 = vpack.i.bf16 %v701_v57, %v700_v26  ;;  %2910 = vmatprep.subr.bf16.mxu0 %v4286_v58 }
 0x19f   : > { %v4277_v31 = vmax.f32 %v3691_v27, 0.0  ;;  %v576_v34 = vpop.f32.mrb[6].mxu0  ;;  %v3780_v1 = vpop.permute.xlu1 %3084 }
 0x1a0   : > { %v702_v36 = vsel %vm693_vm14, %v4273_v29, 0.0  ;;  %v3704_v22 = vadd.f32 %v576_v34, %v467_v53  ;;  %v578_v38 = vpop.f32.mrb[7].mxu0  ;;  %3144 = vrot.lane.b32.xlu1 %v3138_v13, %s3436_s4 }
 0x1a1   : > { %v703_v25 = vsel %vm694_vm15, %v4277_v31, 0.0  ;;  %v3711_v40 = vadd.f32 %v578_v38, %v467_v53 }
 0x1a2   : > { %4299 = vst [vmem:[#allocation9_spill] sm:$0xff] %v3704_v22  ;;  %v4272_v41 = vmax.f32 %v3704_v22, 0.0  ;;  %3129 = vrot.lane.b32.xlu0 %v3118_v6, %s3437_s10  ;;  %v3213_v42 = vpack.i.bf16 %v703_v25, %v702_v36  ;;  %v3233_v45 = vpack.i.bf16 %v704_v16, %v703_v25 }
 0x1a3   : > { %v4276_v47 = vmax.f32 %v3711_v40, 0.0  ;;  %v3788_v2 = vpop.permute.xlu1 %3089 }
 0x1a4   : > { %v705_v49 = vsel %vm693_vm14, %v4272_v41, 0.0  ;;  %3149 = vrot.lane.b32.xlu1 %v3138_v13, %s3437_s10 }
 0x1a5   : > { %v706_v52 = vsel %vm694_vm15, %v4276_v47, 0.0  ;;  %v3238_v53 = vpack.i.bf16 %v705_v49, %v702_v36 }
 0x1a6   : > { %3134 = vrot.lane.b32.xlu0 %v3118_v6, %s3438_s11  ;;  %v3243_v56 = vpack.i.bf16 %v706_v52, %v705_v49  ;;  %v3726_v57 = vpack.i.bf16 %v707_v10, %v706_v52  ;;  %v2572_v6 = vld [vmem:[#allocation4] sm:$0x1]  ;;  %v3077_v49 = vunpack.i.h.bf16 %v3767_v61 }
 0x1a7   : > { %v3795_v5 = vpop.permute.xlu1 %3094 }
 0x1a8   : > { %3154 = vrot.lane.b32.xlu1 %v3138_v13, %s3438_s11  ;;  %v3810_v13 = vpop.permute.xlu0 %3114 }
 0x1aa   : > { %3164 = vrot.lane.b32.xlu0 %v3163_v24, %s3435_s22 }
 0x1ab   : > { %v3800_v7 = vpop.permute.xlu1 %3099 }
 0x1ac   : > { %3159 = vrot.lane.b32.xlu1 %v3673_v15, %s3426_s29 }
 0x1ae   : > { %3169 = vrot.lane.b32.xlu0 %v3163_v24, %s3436_s4 }
 0x1af   : > { %v3806_v10 = vpop.permute.xlu1 %3104 }
 0x1b0   : > { %3184 = vrot.lane.b32.xlu1 %v3693_v28, %s3426_s29 }
 0x1b2   : > { %3174 = vrot.lane.b32.xlu0 %v3163_v24, %s3437_s10 }
 0x1b4   : > { %3214 = vrot.lane.b32.xlu1 %v3213_v42, %s3435_s22 }
 0x1b6   : > { %3179 = vrot.lane.b32.xlu0 %v3163_v24, %s3438_s11 }
 0x1b8   : > { %3219 = vrot.lane.b32.xlu1 %v3213_v42, %s3436_s4 }
 0x1ba   : > { %3189 = vrot.lane.b32.xlu0 %v3188_v30, %s3435_s22 }
 0x1bc   : > { %3224 = vrot.lane.b32.xlu1 %v3213_v42, %s3437_s10 }
 0x1be   : > { %3194 = vrot.lane.b32.xlu0 %v3188_v30, %s3436_s4 }
 0x1c0   : > { %3229 = vrot.lane.b32.xlu1 %v3213_v42, %s3438_s11 }
 0x1c2   : > { %3199 = vrot.lane.b32.xlu0 %v3188_v30, %s3437_s10 }
 0x1c4   : > { %3234 = vrot.lane.b32.xlu1 %v3233_v45, %s3426_s29 }
 0x1c6   : > { %3204 = vrot.lane.b32.xlu0 %v3188_v30, %s3438_s11 }
 0x1c8   : > { %3239 = vrot.lane.b32.xlu1 %v3238_v53, %s3426_s29 }
 0x1ca   : > { %3209 = vrot.lane.b32.xlu0 %v3697_v12, %s3426_s29 }
 0x1cc   : > { %3254 = vrot.lane.b32.xlu1 %v3673_v15, %s3441_s14 }
 0x1ce   : > { %3244 = vrot.lane.b32.xlu0 %v3243_v56, %s3435_s22 }
 0x1d0   : > { %3269 = vrot.lane.b32.xlu1 %v3693_v28, %s3441_s14 }
 0x1d2   : > { %3249 = vrot.lane.b32.xlu0 %v3618_v43, %s3426_s29 }
 0x1d4   : > { %3284 = vrot.lane.b32.xlu1 %v3233_v45, %s3441_s14 }
 0x1d6   : > { %3259 = vrot.lane.b32.xlu0 %v3243_v56, %s3436_s4 }
 0x1d8   : > { %3289 = vrot.lane.b32.xlu1 %v3238_v53, %s3441_s14 }
 0x1da   : > { %3264 = vrot.lane.b32.xlu0 %v3697_v12, %s3441_s14 }
 0x1dc   : > { %3304 = vrot.lane.b32.xlu1 %v3673_v15, %s3427_s30 }
 0x1de   : > { %3274 = vrot.lane.b32.xlu0 %v3243_v56, %s3437_s10  ;;  %s3044_s10 = smul.u32 3, %s4334_s24 }
 0x1e0   : > { %3314 = vrot.lane.b32.xlu1 %v3693_v28, %s3427_s30  ;;  %s251_s13 = scalar_lea.vmem %s4269_s6, %s3044_s10 }
 0x1e2   : > { %3279 = vrot.lane.b32.xlu0 %v3600_v32, %s3441_s14 }
 0x1e4   : > { %3324 = vrot.lane.b32.xlu1 %v3233_v45, %s3427_s30 }
 0x1e6   : > { %3294 = vrot.lane.b32.xlu0 %v3243_v56, %s3438_s11 }
 0x1e8   : > { %3329 = vrot.lane.b32.xlu1 %v3238_v53, %s3427_s30 }
 0x1ea   : > { %3299 = vrot.lane.b32.xlu0 %v3618_v43, %s3441_s14 }
 0x1ec   : > { %3344 = vrot.lane.b32.xlu1 %v3673_v15, %s3428_s7  ;;  %v3812_v15 = vpop.permute.xlu1 %3109 }
 0x1ee   : > { %3309 = vrot.lane.b32.xlu0 %v3697_v12, %s3427_s30 }
 0x1f0   : > { %3359 = vrot.lane.b32.xlu1 %v3693_v28, %s3428_s7 }
 0x1f2   : > { %3319 = vrot.lane.b32.xlu0 %v3600_v32, %s3427_s30 }
 0x1f4   : > { %3374 = vrot.lane.b32.xlu1 %v3233_v45, %s3428_s7 }
 0x1f6   : > { %3334 = vrot.lane.b32.xlu0 %v3726_v57, %s3426_s29 }
 0x1f8   : > { %3379 = vrot.lane.b32.xlu1 %v3238_v53, %s3428_s7 }
 0x1fa   : > { %3339 = vrot.lane.b32.xlu0 %v3618_v43, %s3427_s30 }
 0x1fc   : > { %2575 = vperm.xlu1 %3072, %v2572_v6  }
 0x1fe   : > { %3349 = vrot.lane.b32.xlu0 %v3726_v57, %s3441_s14 }
 0x202   : > { %3354 = vrot.lane.b32.xlu0 %v3697_v12, %s3428_s7 }
 0x206   : > { %3364 = vrot.lane.b32.xlu0 %v3726_v57, %s3427_s30 }
 0x20a   : > { %3369 = vrot.lane.b32.xlu0 %v3600_v32, %s3428_s7 }
 0x20c   : > { %v3120_v16 = vpop.permute.xlu0 %3119 }
 0x20d   : > { %v3122_v56 = vunpack.i.h.bf16 %v3120_v16 }
 0x20e   : > { %3384 = vrot.lane.b32.xlu0 %v3726_v57, %s3428_s7  ;;  %v3140_v19 = vpop.permute.xlu1 %3139  ;;  %v3121_v57 = vunpack.i.l.bf16 %v3120_v16 }
 0x20f   : > { %v3142_v45 = vunpack.i.h.bf16 %v3140_v19  ;;  %v3141_v52 = vunpack.i.l.bf16 %v3140_v19 }
 0x210   : > { %v3818_v20 = vpop.permute.xlu0 %3124 }
 0x211   : > { %v790_v29 = vsel %vm787_vm1, %v3142_v45, %v3121_v57  ;;  %v788_v47 = vsel %vm787_vm1, %v3076_v37, %v3141_v52  ;;  %v3127_v18 = vunpack.i.h.bf16 %v3818_v20 }
 0x212   : > { %3389 = vrot.lane.b32.xlu0 %v3618_v43, %s3428_s7  ;;  %v3822_v23 = vpop.permute.xlu1 %3144 }
 0x214   : > { %v3824_v24 = vpop.permute.xlu0 %3129 }
 0x216   : > { %v3826_v26 = vpop.permute.xlu1 %3149 }
 0x218   : > { %v3828_v28 = vpop.permute.xlu0 %3134 }
 0x21a   : > { %v3830_v30 = vpop.permute.xlu1 %3154 }
 0x21c   : > { %v3832_v32 = vpop.permute.xlu0 %3164 }
 0x21d   : > { %v3167_v63 = vunpack.i.h.bf16 %v3832_v32 }
 0x21e   : > { %v3834_v12 = vpop.permute.xlu1 %3159 }
 0x220   : > { %v3836_v34 = vpop.permute.xlu0 %3169 }
 0x222   : > { %v3838_v36 = vpop.permute.xlu1 %3184 }
 0x224   : > { %v3840_v38 = vpop.permute.xlu0 %3174 }
 0x226   : > { %v3842_v43 = vpop.permute.xlu1 %3214 }
 0x227   : > { %v3217_v57 = vunpack.i.h.bf16 %v3842_v43 }
 0x228   : > { %v3844_v25 = vpop.permute.xlu0 %3179 }
 0x22a   : > { %v3846_v42 = vpop.permute.xlu1 %3219 }
 0x22c   : > { %v3190_v53 = vpop.permute.xlu0 %3189 }
 0x22d   : > { %v3192_v6 = vunpack.i.h.bf16 %v3190_v53  ;;  %v3191_v33 = vunpack.i.l.bf16 %v3190_v53  ;;  %v789_v53 = vsel %vm787_vm1, %v3141_v52, %v3142_v45  ;;  %v3091_v52 = vunpack.i.l.bf16 %v3788_v2 }
 0x22e   : > { %v3850_v41 = vpop.permute.xlu1 %3224 }
 0x22f   : > { %v793_v3 = vsel %vm787_vm1, %v3192_v6, %v3122_v56  ;;  %v791_v8 = vsel %vm787_vm1, %v3077_v49, %v3191_v33  ;;  %v792_v19 = vsel %vm787_vm1, %v3191_v33, %v3192_v6 }
 0x230   : > { %v2911_v31 = vpack.c.bf16 %v793_v3, %v790_v29  ;;  %v3856_v11 = vpop.permute.xlu0 %3194  ;;  %v2904_v16 = vpack.c.bf16 %v791_v8, %v788_v47  ;;  %v2902_v61 = vpack.c.bf16 %v792_v19, %v789_v53  ;;  %v3082_v8 = vunpack.i.h.bf16 %v3774_v62 }
 0x231   : > { %v3081_v29 = vunpack.i.l.bf16 %v3774_v62  ;;  %v3086_v47 = vunpack.i.l.bf16 %v3780_v1  ;;  %v3216_v62 = vunpack.i.l.bf16 %v3842_v43  ;;  %v3196_v50 = vunpack.i.l.bf16 %v3856_v11 }
 0x232   : > { %v3860_v59 = vpop.permute.xlu1 %3229  ;;  %2912 = vmatpush3.bf16.msra.mxu0 %v2911_v31  ;;  %2903 = vmatprep.subr.bf16.mxu1 %v2902_v61  ;;  %v3087_v31 = vunpack.i.h.bf16 %v3780_v1  ;;  %v3166_v61 = vunpack.i.l.bf16 %v3832_v32  ;;  %v3197_v1 = vunpack.i.h.bf16 %v3856_v11  ;;  %v3147_v53 = vunpack.i.h.bf16 %v3822_v23 }
 0x233   : > { %2913 = vmatprep.subr.bf16.mxu0 %v4286_v58  ;;  %2905 = vmatpush1.bf16.msra.mxu1 %v2904_v16  ;;  %v3126_v16 = vunpack.i.l.bf16 %v3818_v20  ;;  %v3146_v43 = vunpack.i.l.bf16 %v3822_v23  ;;  %v794_v35 = vsel %vm787_vm1, %v3081_v29, %v3216_v62  ;;  %v795_v32 = vsel %vm787_vm1, %v3216_v62, %v3217_v57 }
 0x234   : > { %v3863_v56 = vpop.permute.xlu0 %3199  ;;  %v796_v14 = vsel %vm787_vm1, %v3217_v57, %v3166_v61  ;;  %v994_v23 = vsel %vm989_vm2, %v3196_v50, %v3197_v1  ;;  %v3222_v61 = vunpack.i.h.bf16 %v3846_v42  ;;  %v995_v0 = vsel %vm989_vm2, %v3197_v1, %v3127_v18 }
 0x235   : > { %v3221_v29 = vunpack.i.l.bf16 %v3846_v42  ;;  %v3202_v18 = vunpack.i.h.bf16 %v3863_v56  ;;  %v3201_v57 = vunpack.i.l.bf16 %v3863_v56  ;;  %v990_v42 = vsel %vm989_vm2, %v3086_v47, %v3146_v43 }
 0x236   : > { %v3865_v49 = vpop.permute.xlu1 %3234  ;;  %v3152_v62 = vunpack.i.h.bf16 %v3826_v26 }
 0x237   : > { %v996_v56 = vsel %vm989_vm2, %v3091_v52, %v3221_v29  ;;  %v3131_v52 = vunpack.i.l.bf16 %v3824_v24 }
 0x238   : > { %v3867_v37 = vpop.permute.xlu0 %3204 }
 0x23a   : > { %v3869_v3 = vpop.permute.xlu1 %3239 }
 0x23c   : > { %v3871_v33 = vpop.permute.xlu0 %3209 }
 0x23e   : > { %v3880_v6 = vpop.permute.xlu1 %3254 }
 0x240   : > { %v3245_v54 = vpop.permute.xlu0 %3244 }
 0x241   : > { %v3247_v45 = vunpack.i.h.bf16 %v3245_v54  ;;  %v3246_v19 = vunpack.i.l.bf16 %v3245_v54 }
 0x242   : > { %v3895_v58 = vpop.permute.xlu1 %3269 }
 0x243   : > { %4300 = vst [vmem:[#allocation10_spill] sm:$0xff] %v3895_v58  ;;  %v799_v11 = vsel %vm787_vm1, %v3247_v45, %v3167_v63  ;;  %v797_v22 = vsel %vm787_vm1, %v3082_v8, %v3246_v19  ;;  %v798_v20 = vsel %vm787_vm1, %v3246_v19, %v3247_v45  ;;  %v992_v63 = vsel %vm989_vm2, %v3147_v53, %v3126_v16 }
 0x244   : > { %v2908_v21 = vpack.c.bf16 %v797_v22, %v794_v35  ;;  %v2914_v54 = vpack.c.bf16 %v799_v11, %v796_v14  ;;  %v3901_v60 = vpop.permute.xlu0 %3249  ;;  %v2906_v58 = vpack.c.bf16 %v798_v20, %v795_v32  ;;  %v3171_v8 = vunpack.i.l.bf16 %v3836_v34  ;;  %v2688_v22 = vld [vmem:[%s4266_s3 + $0x1] sm:$0x1] }
 0x245   : > { %v991_v14 = vsel %vm989_vm2, %v3146_v43, %v3147_v53  ;;  %v993_v45 = vsel %vm989_vm2, %v3087_v31, %v3196_v50  ;;  %v4301_v16 = vmov 0.0|0.0   ;;  %v2925_v53 = vpack.c.bf16 %v995_v0, %v992_v63 }
 0x246   : > { %v3910_v35 = vpop.permute.xlu1 %3284  ;;  %2915 = vmatpush3.bf16.msra.mxu0 %v2914_v54  ;;  %2907 = vmatprep.subr.bf16.mxu1 %v2906_v58  ;;  %v2916_v19 = vpack.c.bf16 %v994_v23, %v991_v14  ;;  %v3172_v11 = vunpack.i.h.bf16 %v3836_v34  ;;  %v998_v50 = vsel %vm989_vm2, %v3222_v61, %v3171_v8  ;;  %v3151_v58 = vunpack.i.l.bf16 %v3826_v26 }
 0x247   : > { %2924 = vmatprep.subr.bf16.mxu0 %v4301_v16  ;;  %2909 = vmatpush1.bf16.msra.mxu1 %v2908_v21  ;;  %v2918_v47 = vpack.c.bf16 %v993_v45, %v990_v42  ;;  %v997_v43 = vsel %vm989_vm2, %v3221_v29, %v3222_v61  ;;  %v4302_v0 = vmov 0.0   ;;  %v3132_v21 = vunpack.i.h.bf16 %v3824_v24 }
 0x248   : > { %v3260_v1 = vpop.permute.xlu0 %3259  ;;  %2917 = vmatprep.subr.bf16.mxu1 %v2916_v19  ;;  %v4303_v54 = vunpack.i.h.bf16 %v3788_v2  ;;  %v1197_v26 = vsel %vm1192_vm7, %v3201_v57, %v3202_v18  ;;  %v3101_v2 = vunpack.i.l.bf16 %v3800_v7  ;;  %v3227_v14 = vunpack.i.h.bf16 %v3850_v41 }
 0x249   : > { %v3262_v31 = vunpack.i.h.bf16 %v3260_v1  ;;  %v3261_v32 = vunpack.i.l.bf16 %v3260_v1  ;;  %2796 = vmatmul.mubr.msk.f32.vlgmr.msra.gmra.mrb[8].mxu0 %vm812_vm3, %v2688_v22  ;;  %v1195_v19 = vsel %vm1192_vm7, %v3152_v62, %v3131_v52  ;;  %v3176_v24 = vunpack.i.l.bf16 %v3840_v38  ;;  %v720_v1 = vld [vmem:[%s4266_s3] sm:$0x1] }
 0x24a   : > { %2926 = vmatpush3.bf16.msra.mxu0 %v2925_v53  ;;  %2806 = vmatprep.mubr.msk.f32.mxu0 %vm3440_vm0, %v4302_v0  ;;  %v3935_v23 = vpop.permute.xlu1 %3289  ;;  %v3226_v42 = vunpack.i.l.bf16 %v3850_v41  ;;  %v1194_v53 = vsel %vm1192_vm7, %v3151_v58, %v3152_v62  ;;  %v4305_v41 = vunpack.i.l.bf16 %v3795_v5 }
 0x24b   : > { %v1001_v34 = vsel %vm989_vm2, %v3262_v31, %v3172_v11  ;;  %v999_v20 = vsel %vm989_vm2, %v4303_v54, %v3261_v32  ;;  %2689 = vmatmul.mubr.msk.f32.vlgmr.msra.gmra.mrb[4].mxu1 %vm812_vm3, %v2688_v22  ;;  %2927 = vmatprep.subr.bf16.mxu0 %v4301_v16  ;;  %v1000_v29 = vsel %vm989_vm2, %v3261_v32, %v3262_v31  ;;  %v4304_v11 = vunpack.i.h.bf16 %v3795_v5 }
 0x24c   : > { %v2922_v61 = vpack.c.bf16 %v999_v20, %v996_v56  ;;  %v2928_v63 = vpack.c.bf16 %v1001_v34, %v998_v50  ;;  %2919 = vmatpush1.bf16.msra.mxu1 %v2918_v47  ;;  %v3941_v8 = vpop.permute.xlu0 %3264  ;;  %1081 = vmatprep.mubr.f32.mxu1 %v4302_v0  ;;  %v1198_v22 = vsel %vm1192_vm7, %v3202_v18, %v3132_v21  ;;  %v3207_v18 = vunpack.i.h.bf16 %v3867_v37 }
 0x24d   : > { %v2920_v45 = vpack.c.bf16 %v1000_v29, %v997_v43  ;;  %v1196_v50 = vsel %vm1192_vm7, %v4304_v11, %v3201_v57  ;;  %v3206_v31 = vunpack.i.l.bf16 %v3867_v37  ;;  %v2930_v32 = vpack.c.bf16 %v1197_v26, %v1194_v53 }
 0x24e   : > { %2929 = vmatpush3.bf16.msra.mxu0 %v2928_v63  ;;  %v1193_v62 = vsel %vm1192_vm7, %v4305_v41, %v3151_v58  ;;  %v3157_v56 = vunpack.i.h.bf16 %v3830_v30  ;;  %v2939_v47 = vpack.c.bf16 %v1198_v22, %v1195_v19  ;;  %v3177_v57 = vunpack.i.h.bf16 %v3840_v38  ;;  %v3967_v34 = vpop.permute.xlu1 %3304 }
 0x24f   : > { %2921 = vmatprep.subr.bf16.mxu1 %v2920_v45  ;;  %2938 = vmatprep.subr.bf16.mxu0 %v4301_v16  ;;  %v1201_v21 = vsel %vm1192_vm7, %v3227_v14, %v3176_v24  ;;  %v3156_v5 = vunpack.i.l.bf16 %v3830_v30  ;;  %v1199_v58 = vsel %vm1192_vm7, %v3101_v2, %v3226_v42  ;;  %v2932_v20 = vpack.c.bf16 %v1196_v50, %v1193_v62  ;;  %v2693_v50 = vld [vmem:[%s4266_s3 + $0x2] sm:$0x1] }
 0x250   : > { %2923 = vmatpush1.bf16.msra.mxu1 %v2922_v61  ;;  %v3275_v43 = vpop.permute.xlu0 %3274  ;;  %v1200_v26 = vsel %vm1192_vm7, %v3226_v42, %v3227_v14  ;;  %v3137_v38 = vunpack.i.h.bf16 %v3828_v28  ;;  %v4306_v61 = vunpack.i.h.bf16 %v3800_v7  ;;  %v1403_v30 = vsel %vm1398_vm8, %v3206_v31, %v3207_v18 }
 0x251   : > { %v3277_v37 = vunpack.i.h.bf16 %v3275_v43  ;;  %v3276_v54 = vunpack.i.l.bf16 %v3275_v43  ;;  %2931 = vmatprep.subr.bf16.mxu1 %v2930_v32  ;;  %2807 = vmatmul.mubr.msk.f32.vlgmr.msra.gmra.mrb[10].mxu0 %vm812_vm3, %v720_v1  ;;  %v3107_v29 = vunpack.i.h.bf16 %v3806_v10  ;;  %v3106_v7 = vunpack.i.l.bf16 %v3806_v10 }
 0x252   : > { %2940 = vmatpush3.bf16.msra.mxu0 %v2939_v47  ;;  %2817 = vmatprep.mubr.msk.f32.mxu0 %vm3440_vm0, %v4302_v0  ;;  %v3136_v19 = vunpack.i.l.bf16 %v3828_v28  ;;  %v1404_v24 = vsel %vm1398_vm8, %v3207_v18, %v3137_v38  ;;  %v3232_v53 = vunpack.i.h.bf16 %v3860_v59  ;;  %v1400_v11 = vsel %vm1398_vm8, %v3156_v5, %v3157_v56  ;;  %v3999_v41 = vpop.permute.xlu1 %3314 }
 0x253   : > { %v1204_v52 = vsel %vm1192_vm7, %v3277_v37, %v3177_v57  ;;  %v1202_v63 = vsel %vm1192_vm7, %v4306_v61, %v3276_v54  ;;  %2691 = vmatmul.mubr.msk.f32.vlgmr.msra.gmra.mrb[4].mxu1 %vm812_vm3, %v720_v1  ;;  %2941 = vmatprep.subr.bf16.mxu0 %v4301_v16  ;;  %v1203_v45 = vsel %vm1192_vm7, %v3276_v54, %v3277_v37  ;;  %v3231_v1 = vunpack.i.l.bf16 %v3860_v59 }
 0x254   : > { %v2936_v2 = vpack.c.bf16 %v1202_v63, %v1199_v58  ;;  %v2942_v14 = vpack.c.bf16 %v1204_v52, %v1201_v21  ;;  %2933 = vmatpush1.bf16.msra.mxu1 %v2932_v20  ;;  %v3984_v22 = vpop.permute.xlu0 %3279  ;;  %1284 = vmatprep.mubr.f32.mxu1 %v4302_v0  ;;  %v2934_v42 = vpack.c.bf16 %v1203_v45, %v1200_v26  ;;  %v3112_v18 = vunpack.i.h.bf16 %v3812_v15 }
 0x255   : > { %v1401_v32 = vsel %vm1398_vm8, %v3157_v56, %v3136_v19  ;;  %v1402_v10 = vsel %vm1398_vm8, %v3107_v29, %v3206_v31  ;;  %v2944_v28 = vpack.c.bf16 %v1403_v30, %v1400_v11  ;;  %v3111_v59 = vunpack.i.l.bf16 %v3812_v15  ;;  %v2696_v30 = vld [vmem:[%s4266_s3 + $0x3] sm:$0x1] }
 0x256   : > { %2943 = vmatpush3.bf16.msra.mxu0 %v2942_v14  ;;  %2935 = vmatprep.subr.bf16.mxu1 %v2934_v42  ;;  %v3181_v62 = vunpack.i.l.bf16 %v3844_v25  ;;  %v2953_v47 = vpack.c.bf16 %v1404_v24, %v1401_v32  ;;  %v1399_v57 = vsel %vm1398_vm8, %v3106_v7, %v3156_v5  ;;  %v3182_v56 = vunpack.i.h.bf16 %v3844_v25  ;;  %v4021_v61 = vpop.permute.xlu1 %3324 }
 0x257   : > { %2952 = vmatprep.subr.bf16.mxu0 %v4301_v16  ;;  %v1405_v54 = vsel %vm1398_vm8, %v3111_v59, %v3231_v1  ;;  %v2946_v58 = vpack.c.bf16 %v1402_v10, %v1399_v57  ;;  %v1406_v25 = vsel %vm1398_vm8, %v3231_v1, %v3232_v53  ;;  %v3162_v29 = vunpack.i.h.bf16 %v3834_v12 }
 0x258   : > { %2937 = vmatpush1.bf16.msra.mxu1 %v2936_v2  ;;  %v3295_v43 = vpop.permute.xlu0 %3294  ;;  %v1407_v37 = vsel %vm1398_vm8, %v3232_v53, %v3181_v62  ;;  %v3116_v2 = vunpack.i.l.bf16 %v3810_v13  ;;  %v3212_v14 = vunpack.i.h.bf16 %v3871_v33  ;;  %v3211_v45 = vunpack.i.l.bf16 %v3871_v33 }
 0x259   : > { %v3297_v31 = vunpack.i.h.bf16 %v3295_v43  ;;  %v3296_v21 = vunpack.i.l.bf16 %v3295_v43  ;;  %2945 = vmatprep.subr.bf16.mxu1 %v2944_v28  ;;  %2818 = vmatmul.mubr.msk.f32.vlgmr.msra.gmra.mrb[12].mxu0 %vm812_vm3, %v2693_v50  ;;  %v3161_v19 = vunpack.i.l.bf16 %v3834_v12  ;;  %v3186_v24 = vunpack.i.l.bf16 %v3838_v36 }
 0x25a   : > { %2954 = vmatpush3.bf16.msra.mxu0 %v2953_v47  ;;  %2828 = vmatprep.mubr.msk.f32.mxu0 %vm3440_vm0, %v4302_v0  ;;  %v3237_v42 = vunpack.i.h.bf16 %v3865_v49  ;;  %v3236_v53 = vunpack.i.l.bf16 %v3865_v49  ;;  %v4309_v33 = vmax.f32 %v3636_v55, 0.0  ;;  %v4310_v11 = vmax.f32 %v3665_v9, 0.0  ;;  %v4070_v10 = vpop.permute.xlu1 %3329 }
 0x25b   : > { %v1410_v15 = vsel %vm1398_vm8, %v3297_v31, %v3182_v56  ;;  %v1408_v5 = vsel %vm1398_vm8, %v3112_v18, %v3296_v21  ;;  %2694 = vmatmul.mubr.msk.f32.vlgmr.msra.gmra.mrb[4].mxu1 %vm812_vm3, %v2693_v50  ;;  %2955 = vmatprep.subr.bf16.mxu0 %v4301_v16  ;;  %v1409_v52 = vsel %vm1398_vm8, %v3296_v21, %v3297_v31  ;;  %v3187_v12 = vunpack.i.h.bf16 %v3838_v36 }
 0x25c   : > { %v2950_v20 = vpack.c.bf16 %v1408_v5, %v1405_v54  ;;  %v2956_v26 = vpack.c.bf16 %v1410_v15, %v1407_v37  ;;  %2947 = vmatpush1.bf16.msra.mxu1 %v2946_v58  ;;  %v4017_v38 = vpop.permute.xlu0 %3299  ;;  %1490 = vmatprep.mubr.f32.mxu1 %v4302_v0  ;;  %v2948_v63 = vpack.c.bf16 %v1409_v52, %v1406_v25  ;;  %v3241_v49 = vunpack.i.l.bf16 %v3869_v3  ;;  %v4321_v54 = vld [vmem:[#allocation10_spill] sm:$0xff] }
 0x25d   : > { %v3400_v50 = vpack.c.bf16 %v4310_v11, %v4309_v33  ;;  %v4313_v55 = vmax.f32 %v3629_v48, 0.0  ;;  %v4314_v9 = vmax.f32 %v3626_v17, 0.0  ;;  %v3117_v36 = vunpack.i.h.bf16 %v3810_v13 }
 0x25e   : > { %2957 = vmatpush3.bf16.msra.mxu0 %v2956_v26  ;;  %2949 = vmatprep.subr.bf16.mxu1 %v2948_v63  ;;  %v1787_v39 = vsel %vm273_vm5, %v3162_v29, %v3116_v2  ;;  %v1788_v17 = vsel %vm273_vm5, %v3187_v12, %v3211_v45  ;;  %v3257_v48 = vunpack.i.h.bf16 %v3880_v6  ;;  %v3256_v28 = vunpack.i.l.bf16 %v3880_v6  ;;  %v2699_v26 = vld [vmem:[%s4266_s3 + $0x4] sm:$0x1]  ;;  %v4133_v12 = vpop.permute.xlu1 %3344 }
 0x25f   : > { %2966 = vmatprep.subr.bf16.mxu0 %v4301_v16  ;;  %v3403_v32 = vpack.c.bf16 %v4314_v9, %v4313_v55  ;;  %v4317_v18 = vmax.f32 %v3632_v51, 0.0  ;;  %v4318_v59 = vmax.f32 %v3658_v4, 0.0  ;;  %v1789_v43 = vsel %vm273_vm5, %v3211_v45, %v3212_v14  ;;  %v4326_v45 = vld [vmem:[#allocation8_spill] sm:$0xff] }
 0x260   : > { %2951 = vmatpush1.bf16.msra.mxu1 %v2950_v20  ;;  %v4031_v7 = vpop.permute.xlu0 %3309  ;;  %v1785_v44 = vsel %vm273_vm5, %v3186_v24, %v3161_v19  ;;  %v1790_v6 = vsel %vm273_vm5, %v3212_v14, %v3117_v36  ;;  %v4319_v57 = vmax.f32 %v3691_v27, 0.0  ;;  %v4320_v51 = vmax.f32 %v3711_v40, 0.0  ;;  %v4322_v27 = vld [vmem:[#allocation7_spill] sm:$0xff]  ;;  %v4324_v40 = vld [vmem:[#allocation6_spill] sm:$0xff]  ;;  %v4328_v24 = vld [vmem:[#allocation9_spill] sm:$0xff] }
 0x261   : > { %3401 = vmatprep.subr.msk.bf16.mxu1 %vm4040_vm9, %v3400_v50  ;;  %2829 = vmatmul.mubr.msk.f32.vlgmr.msra.gmra.mrb[14].mxu0 %vm812_vm3, %v2696_v30  ;;  %v3406_v62 = vpack.c.bf16 %v4318_v59, %v4317_v18  ;;  %v1786_v4 = vsel %vm273_vm5, %v3161_v19, %v3162_v29  ;;  %v1792_v31 = vsel %vm273_vm5, %v3236_v53, %v3237_v42  ;;  %v3242_v21 = vunpack.i.h.bf16 %v3869_v3 }
 0x262   : > { %3404 = vmatpush3.bf16.msk.msra.mxu0 %vm4056_vm10, %v3403_v32  ;;  %2839 = vmatprep.mubr.msk.f32.mxu0 %vm3440_vm0, %v4302_v0  ;;  %v3409_v56 = vpack.c.bf16 %v4320_v51, %v4319_v57  ;;  %v4106_v37 = vsel %vm273_vm5, %v3241_v49, %v3236_v53  ;;  %v3271_v58 = vunpack.i.l.bf16 %v4321_v54  ;;  %v3251_v15 = vunpack.i.l.bf16 %v3901_v60  ;;  %v2702_v51 = vld [vmem:[%s4266_s3 + $0x5] sm:$0x1] }
 0x263   : > { %2697 = vmatmul.mubr.msk.f32.vlgmr.msra.gmra.mrb[4].mxu1 %vm812_vm3, %v2696_v30  ;;  %2969 = vmatprep.subr.bf16.mxu0 %v4301_v16  ;;  %v4323_v5 = vmax.f32 %v4322_v27, 0.0  ;;  %v4325_v25 = vmax.f32 %v4324_v40, 0.0  ;;  %v2974_v3 = vpack.c.bf16 %v1788_v17, %v1785_v44  ;;  %v3267_v52 = vunpack.i.h.bf16 %v3941_v8 }
 0x264   : > { %3407 = vmatpush1.bf16.msk.msra.mxu1 %vm4080_vm12, %v3406_v62  ;;  %v4090_v47 = vpop.permute.xlu0 %3319  ;;  %1639 = vmatprep.mubr.f32.mxu1 %v4302_v0  ;;  %v3266_v63 = vunpack.i.l.bf16 %v3941_v8  ;;  %v2972_v30 = vpack.c.bf16 %v1789_v43, %v1786_v4  ;;  %v2981_v29 = vpack.c.bf16 %v1790_v6, %v1787_v39  ;;  %v3272_v2 = vunpack.i.h.bf16 %v4321_v54 }
 0x265   : > { %3410 = vmatprep.subr.msk.bf16.mxu1 %vm4040_vm9, %v3409_v56  ;;  %v3412_v20 = vpack.c.bf16 %v4325_v25, %v4323_v5  ;;  %v3252_v14 = vunpack.i.h.bf16 %v3901_v60  ;;  %v4327_v19 = vmax.f32 %v4326_v45, 0.0  ;;  %v4329_v53 = vmax.f32 %v4328_v24, 0.0 }
 0x266   : > { %v1992_v11 = vsel %vm1990_vm11, %v3256_v28, %v3257_v48  ;;  %v3282_v8 = vunpack.i.h.bf16 %v3984_v22  ;;  %v3281_v50 = vunpack.i.l.bf16 %v3984_v22  ;;  %v1991_v60 = vsel %vm1990_vm11, %v3271_v58, %v3256_v28 }
 0x267   : > { %3413 = vmatpush3.bf16.msk.msra.mxu0 %vm4056_vm10, %v3412_v20  ;;  %v3415_v1 = vpack.c.bf16 %v4329_v53, %v4327_v19  ;;  %v1793_v55 = vsel %vm273_vm5, %v3237_v42, %v3251_v15  ;;  %v3287_v9 = vunpack.i.h.bf16 %v3910_v35  ;;  %v3286_v32 = vunpack.i.l.bf16 %v3910_v35 }
 0x268   : > { %2980 = vmatprep.subr.bf16.mxu0 %v4301_v16  ;;  %v3335_v33 = vpop.permute.xlu0 %3334  ;;  %v3291_v22 = vunpack.i.l.bf16 %v3935_v23  ;;  %v1995_v42 = vsel %vm1990_vm11, %v3266_v63, %v3267_v52  ;;  %v1994_v18 = vsel %vm1990_vm11, %v3272_v2, %v3266_v63  ;;  %v1993_v59 = vsel %vm1990_vm11, %v3257_v48, %v3281_v50 }
 0x269   : > { %3416 = vmatpush1.bf16.msk.msra.mxu1 %vm4080_vm12, %v3415_v1  ;;  %v3337_v49 = vunpack.i.h.bf16 %v3335_v33  ;;  %v3336_v46 = vunpack.i.l.bf16 %v3335_v33  ;;  %v1996_v62 = vsel %vm1990_vm11, %v3267_v52, %v3282_v8  ;;  %v3301_v44 = vunpack.i.l.bf16 %v4017_v38 }
 0x26a   : > { %2973 = vmatprep.subr.bf16.mxu1 %v2972_v30  ;;  %2840 = vmatmul.mubr.msk.f32.vlgmr.msra.gmra.mrb[16].mxu0 %vm812_vm3, %v2699_v26  ;;  %v3312_v6 = vunpack.i.h.bf16 %v4031_v7  ;;  %v3311_v57 = vunpack.i.l.bf16 %v4031_v7  ;;  %v1998_v56 = vsel %vm1990_vm11, %v3286_v32, %v3287_v9  ;;  %v3292_v4 = vunpack.i.h.bf16 %v3935_v23 }
 0x26b   : > { %2982 = vmatpush3.bf16.msra.mxu0 %v2981_v29  ;;  %2850 = vmatprep.mubr.msk.f32.mxu0 %vm3440_vm0, %v4302_v0  ;;  %v1794_v36 = vsel %vm273_vm5, %v3242_v21, %v3336_v46  ;;  %v1796_v39 = vsel %vm273_vm5, %v3337_v49, %v3252_v14  ;;  %v1795_v13 = vsel %vm273_vm5, %v3336_v46, %v3337_v49  ;;  %v3307_v21 = vunpack.i.h.bf16 %v3967_v34 }
 0x26c   : > { %2700 = vmatmul.mubr.msk.f32.vlgmr.msra.gmra.mrb[4].mxu1 %vm812_vm3, %v2699_v26  ;;  %2983 = vmatprep.subr.bf16.mxu0 %v4301_v16  ;;  %v2978_v17 = vpack.c.bf16 %v1794_v36, %v4106_v37  ;;  %v2984_v28 = vpack.c.bf16 %v1796_v39, %v1793_v55  ;;  %v4149_v35 = vpop.permute.xlu0 %3339  ;;  %v2976_v43 = vpack.c.bf16 %v1795_v13, %v1792_v31  ;;  %v4166_v31 = vpop.permute.xlu1 %3359  ;;  %v3306_v54 = vunpack.i.l.bf16 %v3967_v34 }
 0x26d   : > { %2975 = vmatpush1.bf16.msra.mxu1 %v2974_v3  ;;  %1876 = vmatprep.mubr.f32.mxu1 %v4302_v0  ;;  %v1997_v48 = vsel %vm1990_vm11, %v3291_v22, %v3286_v32  ;;  %v2986_v37 = vpack.c.bf16 %v1995_v42, %v1992_v11  ;;  %v2988_v7 = vpack.c.bf16 %v1994_v18, %v1991_v60  ;;  %v3302_v15 = vunpack.i.h.bf16 %v4017_v38  ;;  %v2705_v11 = vld [vmem:[%s4266_s3 + $0x6] sm:$0x1] }
 0x26e   : > { %2977 = vmatprep.subr.bf16.mxu1 %v2976_v43  ;;  %v2995_v58 = vpack.c.bf16 %v1996_v62, %v1993_v59  ;;  %v3322_v23 = vunpack.i.h.bf16 %v4090_v47  ;;  %v3321_v5 = vunpack.i.l.bf16 %v4090_v47  ;;  %v3316_v20 = vunpack.i.l.bf16 %v3999_v41 }
 0x26f   : > { %2985 = vmatpush3.bf16.msra.mxu0 %v2984_v28  ;;  %v3327_v26 = vunpack.i.h.bf16 %v4021_v61  ;;  %v1999_v34 = vsel %vm1990_vm11, %v3287_v9, %v3301_v44  ;;  %v2200_v38 = vsel %vm315_vm4, %v3311_v57, %v3312_v6  ;;  %v3326_v3 = vunpack.i.l.bf16 %v4021_v61 }
 0x270   : > { %2994 = vmatprep.subr.bf16.mxu0 %v4301_v16  ;;  %v3350_v27 = vpop.permute.xlu0 %3349  ;;  %v3317_v61 = vunpack.i.h.bf16 %v3999_v41  ;;  %v3331_v45 = vunpack.i.l.bf16 %v4070_v10  ;;  %v2198_v19 = vsel %vm315_vm4, %v3307_v21, %v3321_v5  ;;  %v2201_v24 = vsel %vm315_vm4, %v3312_v6, %v3322_v23  ;;  %v4193_v53 = vpop.permute.xlu1 %3374 }
 0x271   : > { %2979 = vmatpush1.bf16.msra.mxu1 %v2978_v17  ;;  %v3352_v40 = vunpack.i.h.bf16 %v3350_v27  ;;  %v3351_v25 = vunpack.i.l.bf16 %v3350_v27  ;;  %v3341_v1 = vunpack.i.l.bf16 %v4149_v35  ;;  %v2197_v33 = vsel %vm315_vm4, %v3306_v54, %v3307_v21 }
 0x272   : > { %2987 = vmatprep.subr.bf16.mxu1 %v2986_v37  ;;  %2851 = vmatmul.mubr.msk.f32.vlgmr.msra.gmra.mrb[18].mxu0 %vm812_vm3, %v2702_v51  ;;  %v2196_v41 = vsel %vm315_vm4, %v3316_v20, %v3306_v54  ;;  %v2199_v8 = vsel %vm315_vm4, %v3317_v61, %v3311_v57  ;;  %v3000_v50 = vpack.c.bf16 %v2200_v38, %v2197_v33  ;;  %v3332_v46 = vunpack.i.h.bf16 %v4070_v10 }
 0x273   : > { %2996 = vmatpush3.bf16.msra.mxu0 %v2995_v58  ;;  %2861 = vmatprep.mubr.msk.f32.mxu0 %vm3440_vm0, %v4302_v0  ;;  %v2000_v47 = vsel %vm1990_vm11, %v3292_v4, %v3351_v25  ;;  %v2002_v52 = vsel %vm1990_vm11, %v3352_v40, %v3302_v15  ;;  %v2001_v63 = vsel %vm1990_vm11, %v3351_v25, %v3352_v40  ;;  %v3342_v36 = vunpack.i.h.bf16 %v4149_v35  ;;  %v2708_v58 = vld [vmem:[%s4266_s3 + $0x7] sm:$0x1] }
 0x274   : > { %2703 = vmatmul.mubr.msk.f32.vlgmr.msra.gmra.mrb[4].mxu1 %vm812_vm3, %v2702_v51  ;;  %2997 = vmatprep.subr.bf16.mxu0 %v4301_v16  ;;  %v2992_v30 = vpack.c.bf16 %v2000_v47, %v1997_v48  ;;  %v2998_v29 = vpack.c.bf16 %v2002_v52, %v1999_v34  ;;  %v4186_v2 = vpop.permute.xlu0 %3354  ;;  %v2990_v14 = vpack.c.bf16 %v2001_v63, %v1998_v56  ;;  %v3347_v17 = vunpack.i.h.bf16 %v4133_v12  ;;  %v3380_v18 = vpop.permute.xlu1 %3379 }
 0x275   : > { %2989 = vmatpush1.bf16.msra.mxu1 %v2988_v7  ;;  %2082 = vmatprep.mubr.f32.mxu1 %v4302_v0  ;;  %v2203_v49 = vsel %vm315_vm4, %v3326_v3, %v3327_v26  ;;  %v3009_v60 = vpack.c.bf16 %v2201_v24, %v2198_v19  ;;  %v3357_v55 = vunpack.i.h.bf16 %v4186_v2  ;;  %v3356_v9 = vunpack.i.l.bf16 %v4186_v2 }
 0x276   : > { %2991 = vmatprep.subr.bf16.mxu1 %v2990_v14  ;;  %v2202_v22 = vsel %vm315_vm4, %v3331_v45, %v3326_v3  ;;  %v3346_v10 = vunpack.i.l.bf16 %v4133_v12  ;;  %v3002_v28 = vpack.c.bf16 %v2199_v8, %v2196_v41  ;;  %v2204_v13 = vsel %vm315_vm4, %v3327_v26, %v3341_v1 }
 0x277   : > { %2999 = vmatpush3.bf16.msra.mxu0 %v2998_v29  ;;  %v2405_v57 = vsel %vm335_vm6, %v3356_v9, %v3357_v55  ;;  %v3362_v51 = vunpack.i.h.bf16 %v4166_v31  ;;  %v3361_v56 = vunpack.i.l.bf16 %v4166_v31  ;;  %v3377_v21 = vunpack.i.h.bf16 %v4193_v53 }
 0x278   : > { %3008 = vmatprep.subr.bf16.mxu0 %v4301_v16  ;;  %v3365_v32 = vpop.permute.xlu0 %3364  ;;  %v3376_v37 = vunpack.i.l.bf16 %v4193_v53  ;;  %v3381_v7 = vunpack.i.l.bf16 %v3380_v18  ;;  %v2402_v54 = vsel %vm335_vm6, %v3346_v10, %v3347_v17  ;;  %v3382_v20 = vunpack.i.h.bf16 %v3380_v18  ;;  %v2711_v53 = vld [vmem:[%s4266_s3 + $0x8] sm:$0x1] }
 0x279   : > { %2993 = vmatpush1.bf16.msra.mxu1 %v2992_v30  ;;  %v3367_v39 = vunpack.i.h.bf16 %v3365_v32  ;;  %v3366_v42 = vunpack.i.l.bf16 %v3365_v32  ;;  %v2404_v15 = vsel %vm335_vm6, %v3362_v51, %v3356_v9  ;;  %v3014_v23 = vpack.c.bf16 %v2405_v57, %v2402_v54 }
 0x27a   : > { %3001 = vmatprep.subr.bf16.mxu1 %v3000_v50  ;;  %2862 = vmatmul.mubr.msk.f32.vlgmr.msra.gmra.mrb[20].mxu0 %vm812_vm3, %v2705_v11  ;;  %v2401_v25 = vsel %vm335_vm6, %v3361_v56, %v3346_v10  ;;  %v2408_v3 = vsel %vm335_vm6, %v3376_v37, %v3377_v21  ;;  %v2407_v47 = vsel %vm335_vm6, %v3381_v7, %v3376_v37 }
 0x27b   : > { %3010 = vmatpush3.bf16.msra.mxu0 %v3009_v60  ;;  %2872 = vmatprep.mubr.msk.f32.mxu0 %vm3440_vm0, %v4302_v0  ;;  %v2205_v59 = vsel %vm315_vm4, %v3332_v46, %v3366_v42  ;;  %v2207_v35 = vsel %vm315_vm4, %v3367_v39, %v3342_v36  ;;  %v2206_v62 = vsel %vm315_vm4, %v3366_v42, %v3367_v39 }
 0x27c   : > { %2706 = vmatmul.mubr.msk.f32.vlgmr.msra.gmra.mrb[4].mxu1 %vm812_vm3, %v2705_v11  ;;  %3011 = vmatprep.subr.bf16.mxu0 %v4301_v16  ;;  %v3006_v43 = vpack.c.bf16 %v2205_v59, %v2202_v22  ;;  %v3012_v12 = vpack.c.bf16 %v2207_v35, %v2204_v13  ;;  %v3370_v44 = vpop.permute.xlu0 %3369  ;;  %v3004_v6 = vpack.c.bf16 %v2206_v62, %v2203_v49  ;;  %v3442_v59 = vmov 1966171168   ;;  %v2576_v62 = vpop.permute.xlu1 %2575 }
 0x27d   : > { %3003 = vmatpush1.bf16.msra.mxu1 %v3002_v28  ;;  %v3372_v4 = vunpack.i.h.bf16 %v3370_v44  ;;  %v3371_v48 = vunpack.i.l.bf16 %v3370_v44  ;;  %2287 = vmatprep.mubr.f32.mxu1 %v4302_v0  ;;  %v3016_v38 = vpack.c.bf16 %v2404_v15, %v2401_v25  ;;  %v2590_v35 = vunpack.c.l.s4 %v3442_v59 }
 0x27e   : > { %3005 = vmatprep.subr.bf16.mxu1 %v3004_v6 }
 0x27f   : > { %3013 = vmatpush3.bf16.msra.mxu0 %v3012_v12  ;;  %v2403_v31 = vsel %vm335_vm6, %v3347_v17, %v3371_v48  ;;  %v2406_v27 = vsel %vm335_vm6, %v3357_v55, %v3372_v4  ;;  %v2591_v6 = vunpack.c.0.s8 %v2590_v35 }
 0x280   : > { %3022 = vmatprep.subr.bf16.mxu0 %v4301_v16  ;;  %v3023_v5 = vpack.c.bf16 %v2406_v27, %v2403_v31  ;;  %v3385_v40 = vpop.permute.xlu0 %3384 }
 0x281   : > { %3007 = vmatpush1.bf16.msra.mxu1 %v3006_v43  ;;  %v3387_v26 = vunpack.i.h.bf16 %v3385_v40  ;;  %v3386_v34 = vunpack.i.l.bf16 %v3385_v40  ;;  %v4330_v43 = vld [vmem:[#allocation5_spill] sm:$0xff] }
 0x282   : > { %3015 = vmatprep.subr.bf16.mxu1 %v3014_v23  ;;  %2873 = vmatmul.mubr.msk.f32.vlgmr.msra.gmra.mrb[22].mxu0 %vm812_vm3, %v2708_v58  ;;  %v4331_v12 = vsub.s32 0, %v4330_v43  ;;  %v4332_v23 = vlaneseq }
 0x283   : > { %3024 = vmatpush3.bf16.msra.mxu0 %v3023_v5  ;;  %2883 = vmatprep.mubr.msk.f32.mxu0 %vm3440_vm0, %v4302_v0  ;;  %v2410_v52 = vsel %vm335_vm6, %v3382_v20, %v3386_v34  ;;  %v2411_v63 = vsel %vm335_vm6, %v3386_v34, %v3387_v26 }
 0x284   : > { %2709 = vmatmul.mubr.msk.f32.vlgmr.msra.gmra.mrb[4].mxu1 %vm812_vm3, %v2708_v58  ;;  %3025 = vmatprep.subr.bf16.mxu0 %v4301_v16  ;;  %v3020_v30 = vpack.c.bf16 %v2410_v52, %v2407_v47  ;;  %v3390_v29 = vpop.permute.xlu0 %3389  ;;  %v3018_v2 = vpack.c.bf16 %v2411_v63, %v2408_v3  ;;  %v2581_v44 = vrot.slane %v2576_v62, %v4331_v12  ;;  %vm2614_vm4 = vcmp.lt.s32.totalorder %v4332_v23, 384 }
 0x285   : > { %3017 = vmatpush1.bf16.msra.mxu1 %v3016_v38  ;;  %2492 = vmatprep.mubr.f32.mxu1 %v4302_v0  ;;  %v3392_v14 = vunpack.i.h.bf16 %v3390_v29  ;;  %v3391_v61 = vunpack.i.l.bf16 %v3390_v29 }
 0x286   : > { %3019 = vmatprep.subr.bf16.mxu1 %v3018_v2 }
 0x287   : > { %v2409_v45 = vsel %vm335_vm6, %v3377_v21, %v3391_v61  ;;  %v2412_v19 = vsel %vm335_vm6, %v3387_v26, %v3392_v14  ;;  %v2594_v21 = vsub.s32 %v2591_v6, %v4330_v43 }
 0x288   : > { %v3026_v24 = vpack.c.bf16 %v2412_v19, %v2409_v45 }
 0x289   : > { %3021 = vmatpush1.bf16.msra.mxu1 %v3020_v30 }
 0x28a   : > { %3027 = vmatpush3.bf16.msra.mxu0 %v3026_v24 }
 0x28c   : > { %2712 = vmatmul.mubr.msk.f32.vlgmr.msra.gmra.mrb[4].mxu1 %vm812_vm3, %v2711_v53 }
 0x28d   : > { %2884 = vmatmul.mubr.msk.f32.vlgmr.msra.gmra.mrb[24].mxu0 %vm812_vm3, %v2711_v53 }
 0x31c   : > { %v953_v16 = vpop.f32.mrb[8].mxu0 }
 0x31d   : > { %v2797_v0 = vpop.f32.mrb[9].mxu0 }
 0x324   : > { %v1154_v1 = vpop.f32.mrb[10].mxu0 }
 0x325   : > { %v1155_v33 = vadd.f32 %v1154_v1, %v953_v16  ;;  %v2808_v11 = vpop.f32.mrb[11].mxu0 }
 0x32c   : > { %v1357_v41 = vpop.f32.mrb[12].mxu0 }
 0x32d   : > { %v1363_v8 = vadd.f32 %v1357_v41, %v1155_v33  ;;  %v2819_v50 = vpop.f32.mrb[13].mxu0 }
 0x334   : > { %v1563_v49 = vpop.f32.mrb[14].mxu0 }
 0x335   : > { %v1569_v46 = vadd.f32 %v1563_v49, %v1363_v8  ;;  %v2830_v60 = vpop.f32.mrb[15].mxu0 }
 0x33d   : > { %v1712_v55 = vpop.f32.mrb[16].mxu0 }
 0x33e   : > { %v1718_v9 = vadd.f32 %v1712_v55, %v1569_v46  ;;  %v2841_v32 = vpop.f32.mrb[17].mxu0 }
 0x345   : > { %v1949_v22 = vpop.f32.mrb[18].mxu0 }
 0x346   : > { %v1955_v36 = vadd.f32 %v1949_v22, %v1718_v9  ;;  %v2852_v39 = vpop.f32.mrb[19].mxu0 }
 0x34d   : > { %v2155_v42 = vpop.f32.mrb[20].mxu0 }
 0x34e   : > { %v2161_v17 = vadd.f32 %v2155_v42, %v1955_v36  ;;  %v2863_v10 = vpop.f32.mrb[21].mxu0 }
 0x355   : > { %v2360_v28 = vpop.f32.mrb[22].mxu0 }
 0x356   : > { %v2366_v13 = vadd.f32 %v2360_v28, %v2161_v17  ;;  %v2874_v18 = vpop.f32.mrb[23].mxu0 }
 0x35f   : > { %v2494_v57 = vpop.f32.mrb[4].mxu1 }
 0x360   : > { %v2582_v51 = vadd.f32 %v2581_v44, %v2494_v57  ;;  %v2496_v56 = vpop.f32.mrb[5].mxu1  ;;  %v2565_v48 = vpop.f32.mrb[24].mxu0 }
 0x361   : > { %v2583_v4 = vadd.f32 %v2581_v44, %v2496_v56  ;;  %v2571_v37 = vadd.f32 %v2565_v48, %v2366_v13  ;;  %v2885_v7 = vpop.f32.mrb[25].mxu0 }
 0x363   : > { %v2588_v54 = vcombine.low %v2582_v51, %v2583_v4  ;;  %v2584_v58 = vadd.f32 %v2581_v44, %v2571_v37 }
 0x365   : > { %v2595_v15 = vrot.slane %v2588_v54, %v2594_v21  ;;  %v2602_v31 = vrot.slane %v2584_v58, %v2594_v21 }
 0x367   : > { %v2603_v27 = vcombine.low %v2595_v15, %v2602_v31 }
 0x369   : > { %v2610_v5 = vrot.slane %v2603_v27, %v2594_v21 }
 0x36b   : > { %2616 = vst.msk [vmem:[%s251_s13] sm:$0x7] %vm2614_vm4, %v2610_v5 }
 0x36c PF: > { %s18_s23 = sadd.s32 1, %s3423_s23  }
 0x36d   : > { %p15_p4 = scmp.ge.s32.totalorder %s18_s23, 4  }
 0x36f   :  { %17 = sbr.rel (!%p15_p4) target bundleno = 3 (0x3), region = 82 }

</bundles_post_ra>
